<compile_context>
chip_gen: v7x
topology: tpu7x:2x2x1
jax: 0.10.0
libtpu: 0.0.40
codegen_flags: <defaults>
</compile_context>

<pallas_src>
import functools

import jax
import jax.numpy as jnp
from jax import lax
from jax.experimental import pallas as pl
from jax.experimental.pallas import tpu as pltpu


# ----------------------------- Pallas kernel --------------------------------

def attention_kernel(n_head, hidden_dim, k_len,
                     qk_ref, wqk_ref, bqk_ref, wproj_ref, bproj_ref,
                     out_ref, score_ref, ctx_ref):
    """Bi-linear multi-head attention for one batch element (all heads fused)."""
    hd = hidden_dim
    Hd = n_head * hd
    q_len = qk_ref.shape[1] - k_len

    # One merged projection pass for Q and K:
    #   rows [0:q_len]      x lanes [0:Hd]     -> qw  (bilinear weight already folded in)
    #   rows [q_len:]       x lanes [Hd:2*Hd]  -> kx
    # Cross terms are computed but discarded (MXU is <5% utilized at this size).
    x = qk_ref[0]                                                       # (q_len+k_len, E)
    proj = (jnp.dot(x, wqk_ref[...], preferred_element_type=jnp.float32)
            + bqk_ref[...])                                             # (q_len+k_len, 2*Hd)

    for h in range(n_head):                                             # static, unrolled
        qwh = proj[:q_len, h * hd:(h + 1) * hd]                         # (q_len, hd)
        kh = proj[q_len:, Hd + h * hd:Hd + (h + 1) * hd]                # (k_len, hd)
        # score = qw_h @ k_h^T (contract last dims; no explicit transpose)
        s = lax.dot_general(qwh, kh, (((1,), (1,)), ((), ())),
                            preferred_element_type=jnp.float32)         # (q_len, k_len)
        m = jnp.max(s, axis=-1, keepdims=True)
        p = jnp.exp(s - m)
        inv = pl.reciprocal(jnp.sum(p, axis=-1, keepdims=True), approx=False)
        attn = p * inv                                                  # softmax (returned)
        # Lane-dense score slab: head h occupies lanes [h*k_len, (h+1)*k_len).
        score_ref[0, :, h * k_len:(h + 1) * k_len] = attn
        # Context tile written straight into the (q_len, Hd) scratch slab.
        ctx_ref[:, h * hd:(h + 1) * hd] = jnp.dot(
            attn, kh, preferred_element_type=jnp.float32)               # (q_len, hd)

    # Output projection; dropout(p=0) == identity.
    out_ref[0] = (jnp.dot(ctx_ref[...], wproj_ref[...],
                          preferred_element_type=jnp.float32) + bproj_ref[...])


# ------------------------------ Host wrapper ---------------------------------

def attention_forward(k, q, params, n_head):
    if q.ndim == 2:
        q = q[:, None, :]
    if k.ndim == 2:
        k = k[:, None, :]
    B, k_len, E = k.shape
    q_len = q.shape[1]
    Hd = params['wq'].shape[1]
    hd = Hd // n_head
    out_dim = params['wproj'].shape[1]

    # Fold the block-diagonal bilinear weight into the Q projection (exact: kron(I, W)
    # has zero off-blocks, so per-head math is unchanged up to fp32 associativity).
    wbd = jnp.kron(jnp.eye(n_head, dtype=params['w_bilinear'].dtype),
                   params['w_bilinear'])                                # (Hd, Hd)
    wq_eff = params['wq'] @ wbd                                         # (E, Hd)
    bq_eff = params['bq'] @ wbd                                         # (1, Hd)

    # Merge Q/K projections: one (E, 2*Hd) weight, one (1, 2*Hd) bias, one packed input.
    w_qk = jnp.concatenate([wq_eff, params['wk']], axis=1)              # (E, 2*Hd)
    b_qk = jnp.concatenate([bq_eff, params['bk']], axis=1)              # (1, 2*Hd)
    qk = jnp.concatenate([q, k], axis=1)                                # (B, q_len+k_len, E)

    grid_spec = pltpu.PrefetchScalarGridSpec(
        num_scalar_prefetch=0,
        grid=(B,),
        in_specs=[
            pl.BlockSpec((1, q_len + k_len, E), lambda b: (b, 0, 0)),   # packed [q; k]
            pl.BlockSpec((E, 2 * Hd), lambda b: (0, 0)),                # [Wq' | Wk]
            pl.BlockSpec((1, 2 * Hd), lambda b: (0, 0)),                # [bq' | bk]
            pl.BlockSpec((Hd, out_dim), lambda b: (0, 0)),              # proj weight
            pl.BlockSpec((1, out_dim), lambda b: (0, 0)),               # proj bias
        ],
        out_specs=[
            pl.BlockSpec((1, q_len, out_dim), lambda b: (b, 0, 0)),             # output
            pl.BlockSpec((1, q_len, n_head * k_len), lambda b: (b, 0, 0)),      # score (lane-dense)
        ],
        scratch_shapes=[pltpu.VMEM((q_len, Hd), jnp.float32)],          # ctx slab
    )

    out, score_ld = pl.pallas_call(
        functools.partial(attention_kernel, n_head, hd, k_len),
        out_shape=(jax.ShapeDtypeStruct((B, q_len, out_dim), jnp.float32),
                   jax.ShapeDtypeStruct((B, q_len, n_head * k_len), jnp.float32)),
        grid_spec=grid_spec,
        compiler_params=pltpu.CompilerParams(
            dimension_semantics=("parallel",),      # 2 batch elems -> 2 TCs on v7x
            vmem_limit_bytes=32 * 1024 * 1024,
        ),
    )(qk, w_qk, b_qk, params['wproj'], params['bproj'])

    # torch returns score with batch index h*mb + b -> cheap wrapper-side layout fix.
    score = score_ld.reshape(B, q_len, n_head, k_len).transpose(2, 0, 1, 3)
    score = score.reshape(n_head * B, q_len, k_len)
    return out, score


# -------------------------- Pure-JAX reference -------------------------------

def ref_attention(k, q, params, n_head):
    if q.ndim == 2:
        q = q[:, None, :]
    if k.ndim == 2:
        k = k[:, None, :]
    mb, k_len, _ = k.shape
    q_len = q.shape[1]
    Hd = params['wq'].shape[1]
    hd = Hd // n_head

    kx = k @ params['wk'] + params['bk']
    qx = q @ params['wq'] + params['bq']
    kx = kx.reshape(mb, k_len, n_head, hd).transpose(2, 0, 1, 3).reshape(n_head * mb, k_len, hd)
    qx = qx.reshape(mb, q_len, n_head, hd).transpose(2, 0, 1, 3).reshape(n_head * mb, q_len, hd)

    qw = qx @ params['w_bilinear']
    score = jnp.einsum('bqd,bkd->bqk', qw, kx)
    score = jax.nn.softmax(score, axis=-1)
    output = jnp.einsum('bqk,bkd->bqd', score, kx)
    output = jnp.concatenate(jnp.split(output, n_head, axis=0), axis=-1)   # (mb, q_len, Hd)
    output = output @ params['wproj'] + params['bproj']
    return output, score


# ------------------------------ Setup helpers ---------------------------------

def init_params(key, embed_dim, n_head, hidden_dim=None, out_dim=None):
    if hidden_dim is None:
        hidden_dim = embed_dim // n_head
    if out_dim is None:
        out_dim = embed_dim
    Hd = n_head * hidden_dim

    def linear(kk, fan_in, fan_out):
        bound = 1.0 / (fan_in ** 0.5)
        kw, kb = jax.random.split(kk)
        w = jax.random.uniform(kw, (fan_in, fan_out), jnp.float32, -bound, bound)
        b = jax.random.uniform(kb, (1, fan_out), jnp.float32, -bound, bound)
        return w, b

    ks = jax.random.split(key, 4)
    wq, bq = linear(ks[0], embed_dim, Hd)
    wk, bk = linear(ks[1], embed_dim, Hd)
    wproj, bproj = linear(ks[2], Hd, out_dim)
    stdv = 1.0 / (hidden_dim ** 0.5)
    w_bil = jax.random.uniform(ks[3], (hidden_dim, hidden_dim), jnp.float32, -stdv, stdv)
    return dict(wq=wq, bq=bq, wk=wk, bk=bk, wproj=wproj, bproj=bproj, w_bilinear=w_bil)


# ----------------------------------- Main -------------------------------------

if __name__ == "__main__":
    embed_dim = 64
    n_head = 8          # module default -> hidden_dim = 8, out_dim = 64
    batch = 2
    q_len = 8
    k_len = 16

    key = jax.random.PRNGKey(0)
    kq, kk, kp = jax.random.split(key, 3)
    q = jax.random.normal(kq, (batch, q_len, embed_dim), jnp.float32)
    k = jax.random.normal(kk, (batch, k_len, embed_dim), jnp.float32)
    params = init_params(kp, embed_dim, n_head)

    out, score = attention_forward(k, q, params, n_head)
    out = jax.block_until_ready(out)
    score = jax.block_until_ready(score)

    ref_out, ref_score = ref_attention(k, q, params, n_head)
    ref_out = jax.block_until_ready(ref_out)

    assert out.shape == (batch, q_len, embed_dim)
    assert score.shape == (n_head * batch, q_len, k_len)
    assert jnp.allclose(out, ref_out, atol=1e-4, rtol=1e-4), \
        float(jnp.max(jnp.abs(out - ref_out)))
    assert jnp.allclose(score, ref_score, atol=1e-4, rtol=1e-4), \
        float(jnp.max(jnp.abs(score - ref_score)))

    print("KERNEL_OK")
</pallas_src>

<mosaic_0001>
module attributes {stable_mosaic.version = 11 : i64} {
  func.func @attention_kernel(%arg0: i32, %arg1: memref<1x24x64xf32, #tpu.memory_space<vmem>>, %arg2: memref<64x128xf32, #tpu.memory_space<vmem>>, %arg3: memref<1x128xf32, #tpu.memory_space<vmem>>, %arg4: memref<64x64xf32, #tpu.memory_space<vmem>>, %arg5: memref<1x64xf32, #tpu.memory_space<vmem>>, %arg6: memref<1x8x64xf32, #tpu.memory_space<vmem>>, %arg7: memref<1x8x128xf32, #tpu.memory_space<vmem>>, %arg8: memref<8x64xf32, #tpu.memory_space<vmem>>) attributes {dimension_semantics = [#tpu.dimension_semantics<parallel>], iteration_bounds = array<i64: 2>, scalar_prefetch = 0 : i64, scratch_operands = 1 : i64, tpu.core_type = #tpu.core_type<tc>, window_params = [{transform_indices = @transform_0, window_bounds = array<i64: 1, 24, 64>}, {pipeline_mode = #tpu.pipeline_mode<synchronous>, transform_indices = @transform_1, window_bounds = array<i64: 64, 128>}, {pipeline_mode = #tpu.pipeline_mode<synchronous>, transform_indices = @transform_2, window_bounds = array<i64: 1, 128>}, {pipeline_mode = #tpu.pipeline_mode<synchronous>, transform_indices = @transform_3, window_bounds = array<i64: 64, 64>}, {pipeline_mode = #tpu.pipeline_mode<synchronous>, transform_indices = @transform_4, window_bounds = array<i64: 1, 64>}, {transform_indices = @transform_5, window_bounds = array<i64: 1, 8, 64>}, {transform_indices = @transform_6, window_bounds = array<i64: 1, 8, 128>}]} {
    %c0 = arith.constant 0 : index
    %c0_0 = arith.constant 0 : index
    %c0_1 = arith.constant 0 : index
    %0 = vector.load %arg1[%c0, %c0_0, %c0_1] : memref<1x24x64xf32, #tpu.memory_space<vmem>>, vector<1x24x64xf32>
    %1 = vector.shape_cast %0 : vector<1x24x64xf32> to vector<24x64xf32>
    %c0_2 = arith.constant 0 : index
    %c0_3 = arith.constant 0 : index
    %2 = vector.load %arg2[%c0_2, %c0_3] : memref<64x128xf32, #tpu.memory_space<vmem>>, vector<64x128xf32>
    %cst = arith.constant dense<0.000000e+00> : vector<24x128xf32>
    %3 = tpu.matmul %1, %2, %cst {dimension_numbers = #tpu.dot_dimension_numbers<[1], [0], [0], [1], [0, 0, 1, 1], [], []>} : vector<24x64xf32>, vector<64x128xf32>, vector<24x128xf32> -> vector<24x128xf32>
    %c0_4 = arith.constant 0 : index
    %c0_5 = arith.constant 0 : index
    %4 = vector.load %arg3[%c0_4, %c0_5] : memref<1x128xf32, #tpu.memory_space<vmem>>, vector<1x128xf32>
    %5 = vector.broadcast %4 : vector<1x128xf32> to vector<24x128xf32>
    %6 = arith.addf %3, %5 : vector<24x128xf32>
    %7 = vector.extract_strided_slice %6 {offsets = [0, 0], sizes = [8, 8], strides = [1, 1]} : vector<24x128xf32> to vector<8x8xf32>
    %8 = vector.extract_strided_slice %6 {offsets = [8, 64], sizes = [16, 8], strides = [1, 1]} : vector<24x128xf32> to vector<16x8xf32>
    %cst_6 = arith.constant dense<0.000000e+00> : vector<8x16xf32>
    %9 = tpu.matmul %7, %8, %cst_6 {dimension_numbers = #tpu.dot_dimension_numbers<[1], [1], [0], [0], [0, 0, 1, 0], [], []>} : vector<8x8xf32>, vector<16x8xf32>, vector<8x16xf32> -> vector<8x16xf32>
    %cst_7 = arith.constant dense<0xFF800000> : vector<8xf32>
    %10 = vector.multi_reduction <maximumf>, %9, %cst_7 [1] : vector<8x16xf32> to vector<8xf32>
    %11 = vector.shape_cast %10 : vector<8xf32> to vector<8x1xf32>
    %12 = vector.broadcast %11 : vector<8x1xf32> to vector<8x16xf32>
    %13 = arith.subf %9, %12 : vector<8x16xf32>
    %14 = math.exp %13 : vector<8x16xf32>
    %cst_8 = arith.constant dense<0.000000e+00> : vector<8xf32>
    %15 = vector.multi_reduction <add>, %14, %cst_8 [1] : vector<8x16xf32> to vector<8xf32>
    %16 = vector.shape_cast %15 : vector<8xf32> to vector<8x1xf32>
    %17 = tpu.reciprocal %16 : vector<8x1xf32> -> vector<8x1xf32>
    %18 = vector.broadcast %17 : vector<8x1xf32> to vector<8x16xf32>
    %19 = arith.mulf %14, %18 : vector<8x16xf32>
    %c0_9 = arith.constant 0 : index
    %c0_10 = arith.constant 0 : index
    %c0_11 = arith.constant 0 : index
    %20 = vector.load %arg7[%c0_9, %c0_10, %c0_11] : memref<1x8x128xf32, #tpu.memory_space<vmem>>, vector<1x8x16xf32>
    %21 = vector.shape_cast %20 : vector<1x8x16xf32> to vector<8x16xf32>
    %22 = vector.shape_cast %19 : vector<8x16xf32> to vector<1x8x16xf32>
    tpu.vector_store %arg7[%c0_9, %c0_10, %c0_11], %22 {strides = array<i32>} : memref<1x8x128xf32, #tpu.memory_space<vmem>>, vector<1x8x16xf32>,
    %cst_12 = arith.constant dense<0.000000e+00> : vector<8x8xf32>
    %23 = tpu.matmul %19, %8, %cst_12 {dimension_numbers = #tpu.dot_dimension_numbers<[1], [0], [0], [1], [0, 0, 1, 1], [], []>} : vector<8x16xf32>, vector<16x8xf32>, vector<8x8xf32> -> vector<8x8xf32>
    %c0_13 = arith.constant 0 : index
    %c0_14 = arith.constant 0 : index
    %24 = vector.load %arg8[%c0_13, %c0_14] : memref<8x64xf32, #tpu.memory_space<vmem>>, vector<8x8xf32>
    tpu.vector_store %arg8[%c0_13, %c0_14], %23 {strides = array<i32>} : memref<8x64xf32, #tpu.memory_space<vmem>>, vector<8x8xf32>,
    %25 = vector.extract_strided_slice %6 {offsets = [0, 8], sizes = [8, 8], strides = [1, 1]} : vector<24x128xf32> to vector<8x8xf32>
    %26 = vector.extract_strided_slice %6 {offsets = [8, 72], sizes = [16, 8], strides = [1, 1]} : vector<24x128xf32> to vector<16x8xf32>
    %cst_15 = arith.constant dense<0.000000e+00> : vector<8x16xf32>
    %27 = tpu.matmul %25, %26, %cst_15 {dimension_numbers = #tpu.dot_dimension_numbers<[1], [1], [0], [0], [0, 0, 1, 0], [], []>} : vector<8x8xf32>, vector<16x8xf32>, vector<8x16xf32> -> vector<8x16xf32>
    %cst_16 = arith.constant dense<0xFF800000> : vector<8xf32>
    %28 = vector.multi_reduction <maximumf>, %27, %cst_16 [1] : vector<8x16xf32> to vector<8xf32>
    %29 = vector.shape_cast %28 : vector<8xf32> to vector<8x1xf32>
    %30 = vector.broadcast %29 : vector<8x1xf32> to vector<8x16xf32>
    %31 = arith.subf %27, %30 : vector<8x16xf32>
    %32 = math.exp %31 : vector<8x16xf32>
    %cst_17 = arith.constant dense<0.000000e+00> : vector<8xf32>
    %33 = vector.multi_reduction <add>, %32, %cst_17 [1] : vector<8x16xf32> to vector<8xf32>
    %34 = vector.shape_cast %33 : vector<8xf32> to vector<8x1xf32>
    %35 = tpu.reciprocal %34 : vector<8x1xf32> -> vector<8x1xf32>
    %36 = vector.broadcast %35 : vector<8x1xf32> to vector<8x16xf32>
    %37 = arith.mulf %32, %36 : vector<8x16xf32>
    %c0_18 = arith.constant 0 : index
    %c0_19 = arith.constant 0 : index
    %c16 = arith.constant 16 : index
    %38 = vector.load %arg7[%c0_18, %c0_19, %c16] : memref<1x8x128xf32, #tpu.memory_space<vmem>>, vector<1x8x16xf32>
    %39 = vector.shape_cast %38 : vector<1x8x16xf32> to vector<8x16xf32>
    %40 = vector.shape_cast %37 : vector<8x16xf32> to vector<1x8x16xf32>
    tpu.vector_store %arg7[%c0_18, %c0_19, %c16], %40 {strides = array<i32>} : memref<1x8x128xf32, #tpu.memory_space<vmem>>, vector<1x8x16xf32>,
    %cst_20 = arith.constant dense<0.000000e+00> : vector<8x8xf32>
    %41 = tpu.matmul %37, %26, %cst_20 {dimension_numbers = #tpu.dot_dimension_numbers<[1], [0], [0], [1], [0, 0, 1, 1], [], []>} : vector<8x16xf32>, vector<16x8xf32>, vector<8x8xf32> -> vector<8x8xf32>
    %c0_21 = arith.constant 0 : index
    %c8 = arith.constant 8 : index
    %42 = vector.load %arg8[%c0_21, %c8] : memref<8x64xf32, #tpu.memory_space<vmem>>, vector<8x8xf32>
    tpu.vector_store %arg8[%c0_21, %c8], %41 {strides = array<i32>} : memref<8x64xf32, #tpu.memory_space<vmem>>, vector<8x8xf32>,
    %43 = vector.extract_strided_slice %6 {offsets = [0, 16], sizes = [8, 8], strides = [1, 1]} : vector<24x128xf32> to vector<8x8xf32>
    %44 = vector.extract_strided_slice %6 {offsets = [8, 80], sizes = [16, 8], strides = [1, 1]} : vector<24x128xf32> to vector<16x8xf32>
    %cst_22 = arith.constant dense<0.000000e+00> : vector<8x16xf32>
    %45 = tpu.matmul %43, %44, %cst_22 {dimension_numbers = #tpu.dot_dimension_numbers<[1], [1], [0], [0], [0, 0, 1, 0], [], []>} : vector<8x8xf32>, vector<16x8xf32>, vector<8x16xf32> -> vector<8x16xf32>
    %cst_23 = arith.constant dense<0xFF800000> : vector<8xf32>
    %46 = vector.multi_reduction <maximumf>, %45, %cst_23 [1] : vector<8x16xf32> to vector<8xf32>
    %47 = vector.shape_cast %46 : vector<8xf32> to vector<8x1xf32>
    %48 = vector.broadcast %47 : vector<8x1xf32> to vector<8x16xf32>
    %49 = arith.subf %45, %48 : vector<8x16xf32>
    %50 = math.exp %49 : vector<8x16xf32>
    %cst_24 = arith.constant dense<0.000000e+00> : vector<8xf32>
    %51 = vector.multi_reduction <add>, %50, %cst_24 [1] : vector<8x16xf32> to vector<8xf32>
    %52 = vector.shape_cast %51 : vector<8xf32> to vector<8x1xf32>
    %53 = tpu.reciprocal %52 : vector<8x1xf32> -> vector<8x1xf32>
    %54 = vector.broadcast %53 : vector<8x1xf32> to vector<8x16xf32>
    %55 = arith.mulf %50, %54 : vector<8x16xf32>
    %c0_25 = arith.constant 0 : index
    %c0_26 = arith.constant 0 : index
    %c32 = arith.constant 32 : index
    %56 = vector.load %arg7[%c0_25, %c0_26, %c32] : memref<1x8x128xf32, #tpu.memory_space<vmem>>, vector<1x8x16xf32>
    %57 = vector.shape_cast %56 : vector<1x8x16xf32> to vector<8x16xf32>
    %58 = vector.shape_cast %55 : vector<8x16xf32> to vector<1x8x16xf32>
    tpu.vector_store %arg7[%c0_25, %c0_26, %c32], %58 {strides = array<i32>} : memref<1x8x128xf32, #tpu.memory_space<vmem>>, vector<1x8x16xf32>,
    %cst_27 = arith.constant dense<0.000000e+00> : vector<8x8xf32>
    %59 = tpu.matmul %55, %44, %cst_27 {dimension_numbers = #tpu.dot_dimension_numbers<[1], [0], [0], [1], [0, 0, 1, 1], [], []>} : vector<8x16xf32>, vector<16x8xf32>, vector<8x8xf32> -> vector<8x8xf32>
    %c0_28 = arith.constant 0 : index
    %c16_29 = arith.constant 16 : index
    %60 = vector.load %arg8[%c0_28, %c16_29] : memref<8x64xf32, #tpu.memory_space<vmem>>, vector<8x8xf32>
    tpu.vector_store %arg8[%c0_28, %c16_29], %59 {strides = array<i32>} : memref<8x64xf32, #tpu.memory_space<vmem>>, vector<8x8xf32>,
    %61 = vector.extract_strided_slice %6 {offsets = [0, 24], sizes = [8, 8], strides = [1, 1]} : vector<24x128xf32> to vector<8x8xf32>
    %62 = vector.extract_strided_slice %6 {offsets = [8, 88], sizes = [16, 8], strides = [1, 1]} : vector<24x128xf32> to vector<16x8xf32>
    %cst_30 = arith.constant dense<0.000000e+00> : vector<8x16xf32>
    %63 = tpu.matmul %61, %62, %cst_30 {dimension_numbers = #tpu.dot_dimension_numbers<[1], [1], [0], [0], [0, 0, 1, 0], [], []>} : vector<8x8xf32>, vector<16x8xf32>, vector<8x16xf32> -> vector<8x16xf32>
    %cst_31 = arith.constant dense<0xFF800000> : vector<8xf32>
    %64 = vector.multi_reduction <maximumf>, %63, %cst_31 [1] : vector<8x16xf32> to vector<8xf32>
    %65 = vector.shape_cast %64 : vector<8xf32> to vector<8x1xf32>
    %66 = vector.broadcast %65 : vector<8x1xf32> to vector<8x16xf32>
    %67 = arith.subf %63, %66 : vector<8x16xf32>
    %68 = math.exp %67 : vector<8x16xf32>
    %cst_32 = arith.constant dense<0.000000e+00> : vector<8xf32>
    %69 = vector.multi_reduction <add>, %68, %cst_32 [1] : vector<8x16xf32> to vector<8xf32>
    %70 = vector.shape_cast %69 : vector<8xf32> to vector<8x1xf32>
    %71 = tpu.reciprocal %70 : vector<8x1xf32> -> vector<8x1xf32>
    %72 = vector.broadcast %71 : vector<8x1xf32> to vector<8x16xf32>
    %73 = arith.mulf %68, %72 : vector<8x16xf32>
    %c0_33 = arith.constant 0 : index
    %c0_34 = arith.constant 0 : index
    %c48 = arith.constant 48 : index
    %74 = vector.load %arg7[%c0_33, %c0_34, %c48] : memref<1x8x128xf32, #tpu.memory_space<vmem>>, vector<1x8x16xf32>
    %75 = vector.shape_cast %74 : vector<1x8x16xf32> to vector<8x16xf32>
    %76 = vector.shape_cast %73 : vector<8x16xf32> to vector<1x8x16xf32>
    tpu.vector_store %arg7[%c0_33, %c0_34, %c48], %76 {strides = array<i32>} : memref<1x8x128xf32, #tpu.memory_space<vmem>>, vector<1x8x16xf32>,
    %cst_35 = arith.constant dense<0.000000e+00> : vector<8x8xf32>
    %77 = tpu.matmul %73, %62, %cst_35 {dimension_numbers = #tpu.dot_dimension_numbers<[1], [0], [0], [1], [0, 0, 1, 1], [], []>} : vector<8x16xf32>, vector<16x8xf32>, vector<8x8xf32> -> vector<8x8xf32>
    %c0_36 = arith.constant 0 : index
    %c24 = arith.constant 24 : index
    %78 = vector.load %arg8[%c0_36, %c24] : memref<8x64xf32, #tpu.memory_space<vmem>>, vector<8x8xf32>
    tpu.vector_store %arg8[%c0_36, %c24], %77 {strides = array<i32>} : memref<8x64xf32, #tpu.memory_space<vmem>>, vector<8x8xf32>,
    %79 = vector.extract_strided_slice %6 {offsets = [0, 32], sizes = [8, 8], strides = [1, 1]} : vector<24x128xf32> to vector<8x8xf32>
    %80 = vector.extract_strided_slice %6 {offsets = [8, 96], sizes = [16, 8], strides = [1, 1]} : vector<24x128xf32> to vector<16x8xf32>
    %cst_37 = arith.constant dense<0.000000e+00> : vector<8x16xf32>
    %81 = tpu.matmul %79, %80, %cst_37 {dimension_numbers = #tpu.dot_dimension_numbers<[1], [1], [0], [0], [0, 0, 1, 0], [], []>} : vector<8x8xf32>, vector<16x8xf32>, vector<8x16xf32> -> vector<8x16xf32>
    %cst_38 = arith.constant dense<0xFF800000> : vector<8xf32>
    %82 = vector.multi_reduction <maximumf>, %81, %cst_38 [1] : vector<8x16xf32> to vector<8xf32>
    %83 = vector.shape_cast %82 : vector<8xf32> to vector<8x1xf32>
    %84 = vector.broadcast %83 : vector<8x1xf32> to vector<8x16xf32>
    %85 = arith.subf %81, %84 : vector<8x16xf32>
    %86 = math.exp %85 : vector<8x16xf32>
    %cst_39 = arith.constant dense<0.000000e+00> : vector<8xf32>
    %87 = vector.multi_reduction <add>, %86, %cst_39 [1] : vector<8x16xf32> to vector<8xf32>
    %88 = vector.shape_cast %87 : vector<8xf32> to vector<8x1xf32>
    %89 = tpu.reciprocal %88 : vector<8x1xf32> -> vector<8x1xf32>
    %90 = vector.broadcast %89 : vector<8x1xf32> to vector<8x16xf32>
    %91 = arith.mulf %86, %90 : vector<8x16xf32>
    %c0_40 = arith.constant 0 : index
    %c0_41 = arith.constant 0 : index
    %c64 = arith.constant 64 : index
    %92 = vector.load %arg7[%c0_40, %c0_41, %c64] : memref<1x8x128xf32, #tpu.memory_space<vmem>>, vector<1x8x16xf32>
    %93 = vector.shape_cast %92 : vector<1x8x16xf32> to vector<8x16xf32>
    %94 = vector.shape_cast %91 : vector<8x16xf32> to vector<1x8x16xf32>
    tpu.vector_store %arg7[%c0_40, %c0_41, %c64], %94 {strides = array<i32>} : memref<1x8x128xf32, #tpu.memory_space<vmem>>, vector<1x8x16xf32>,
    %cst_42 = arith.constant dense<0.000000e+00> : vector<8x8xf32>
    %95 = tpu.matmul %91, %80, %cst_42 {dimension_numbers = #tpu.dot_dimension_numbers<[1], [0], [0], [1], [0, 0, 1, 1], [], []>} : vector<8x16xf32>, vector<16x8xf32>, vector<8x8xf32> -> vector<8x8xf32>
    %c0_43 = arith.constant 0 : index
    %c32_44 = arith.constant 32 : index
    %96 = vector.load %arg8[%c0_43, %c32_44] : memref<8x64xf32, #tpu.memory_space<vmem>>, vector<8x8xf32>
    tpu.vector_store %arg8[%c0_43, %c32_44], %95 {strides = array<i32>} : memref<8x64xf32, #tpu.memory_space<vmem>>, vector<8x8xf32>,
    %97 = vector.extract_strided_slice %6 {offsets = [0, 40], sizes = [8, 8], strides = [1, 1]} : vector<24x128xf32> to vector<8x8xf32>
    %98 = vector.extract_strided_slice %6 {offsets = [8, 104], sizes = [16, 8], strides = [1, 1]} : vector<24x128xf32> to vector<16x8xf32>
    %cst_45 = arith.constant dense<0.000000e+00> : vector<8x16xf32>
    %99 = tpu.matmul %97, %98, %cst_45 {dimension_numbers = #tpu.dot_dimension_numbers<[1], [1], [0], [0], [0, 0, 1, 0], [], []>} : vector<8x8xf32>, vector<16x8xf32>, vector<8x16xf32> -> vector<8x16xf32>
    %cst_46 = arith.constant dense<0xFF800000> : vector<8xf32>
    %100 = vector.multi_reduction <maximumf>, %99, %cst_46 [1] : vector<8x16xf32> to vector<8xf32>
    %101 = vector.shape_cast %100 : vector<8xf32> to vector<8x1xf32>
    %102 = vector.broadcast %101 : vector<8x1xf32> to vector<8x16xf32>
    %103 = arith.subf %99, %102 : vector<8x16xf32>
    %104 = math.exp %103 : vector<8x16xf32>
    %cst_47 = arith.constant dense<0.000000e+00> : vector<8xf32>
    %105 = vector.multi_reduction <add>, %104, %cst_47 [1] : vector<8x16xf32> to vector<8xf32>
    %106 = vector.shape_cast %105 : vector<8xf32> to vector<8x1xf32>
    %107 = tpu.reciprocal %106 : vector<8x1xf32> -> vector<8x1xf32>
    %108 = vector.broadcast %107 : vector<8x1xf32> to vector<8x16xf32>
    %109 = arith.mulf %104, %108 : vector<8x16xf32>
    %c0_48 = arith.constant 0 : index
    %c0_49 = arith.constant 0 : index
    %c80 = arith.constant 80 : index
    %110 = vector.load %arg7[%c0_48, %c0_49, %c80] : memref<1x8x128xf32, #tpu.memory_space<vmem>>, vector<1x8x16xf32>
    %111 = vector.shape_cast %110 : vector<1x8x16xf32> to vector<8x16xf32>
    %112 = vector.shape_cast %109 : vector<8x16xf32> to vector<1x8x16xf32>
    tpu.vector_store %arg7[%c0_48, %c0_49, %c80], %112 {strides = array<i32>} : memref<1x8x128xf32, #tpu.memory_space<vmem>>, vector<1x8x16xf32>,
    %cst_50 = arith.constant dense<0.000000e+00> : vector<8x8xf32>
    %113 = tpu.matmul %109, %98, %cst_50 {dimension_numbers = #tpu.dot_dimension_numbers<[1], [0], [0], [1], [0, 0, 1, 1], [], []>} : vector<8x16xf32>, vector<16x8xf32>, vector<8x8xf32> -> vector<8x8xf32>
    %c0_51 = arith.constant 0 : index
    %c40 = arith.constant 40 : index
    %114 = vector.load %arg8[%c0_51, %c40] : memref<8x64xf32, #tpu.memory_space<vmem>>, vector<8x8xf32>
    tpu.vector_store %arg8[%c0_51, %c40], %113 {strides = array<i32>} : memref<8x64xf32, #tpu.memory_space<vmem>>, vector<8x8xf32>,
    %115 = vector.extract_strided_slice %6 {offsets = [0, 48], sizes = [8, 8], strides = [1, 1]} : vector<24x128xf32> to vector<8x8xf32>
    %116 = vector.extract_strided_slice %6 {offsets = [8, 112], sizes = [16, 8], strides = [1, 1]} : vector<24x128xf32> to vector<16x8xf32>
    %cst_52 = arith.constant dense<0.000000e+00> : vector<8x16xf32>
    %117 = tpu.matmul %115, %116, %cst_52 {dimension_numbers = #tpu.dot_dimension_numbers<[1], [1], [0], [0], [0, 0, 1, 0], [], []>} : vector<8x8xf32>, vector<16x8xf32>, vector<8x16xf32> -> vector<8x16xf32>
    %cst_53 = arith.constant dense<0xFF800000> : vector<8xf32>
    %118 = vector.multi_reduction <maximumf>, %117, %cst_53 [1] : vector<8x16xf32> to vector<8xf32>
    %119 = vector.shape_cast %118 : vector<8xf32> to vector<8x1xf32>
    %120 = vector.broadcast %119 : vector<8x1xf32> to vector<8x16xf32>
    %121 = arith.subf %117, %120 : vector<8x16xf32>
    %122 = math.exp %121 : vector<8x16xf32>
    %cst_54 = arith.constant dense<0.000000e+00> : vector<8xf32>
    %123 = vector.multi_reduction <add>, %122, %cst_54 [1] : vector<8x16xf32> to vector<8xf32>
    %124 = vector.shape_cast %123 : vector<8xf32> to vector<8x1xf32>
    %125 = tpu.reciprocal %124 : vector<8x1xf32> -> vector<8x1xf32>
    %126 = vector.broadcast %125 : vector<8x1xf32> to vector<8x16xf32>
    %127 = arith.mulf %122, %126 : vector<8x16xf32>
    %c0_55 = arith.constant 0 : index
    %c0_56 = arith.constant 0 : index
    %c96 = arith.constant 96 : index
    %128 = vector.load %arg7[%c0_55, %c0_56, %c96] : memref<1x8x128xf32, #tpu.memory_space<vmem>>, vector<1x8x16xf32>
    %129 = vector.shape_cast %128 : vector<1x8x16xf32> to vector<8x16xf32>
    %130 = vector.shape_cast %127 : vector<8x16xf32> to vector<1x8x16xf32>
    tpu.vector_store %arg7[%c0_55, %c0_56, %c96], %130 {strides = array<i32>} : memref<1x8x128xf32, #tpu.memory_space<vmem>>, vector<1x8x16xf32>,
    %cst_57 = arith.constant dense<0.000000e+00> : vector<8x8xf32>
    %131 = tpu.matmul %127, %116, %cst_57 {dimension_numbers = #tpu.dot_dimension_numbers<[1], [0], [0], [1], [0, 0, 1, 1], [], []>} : vector<8x16xf32>, vector<16x8xf32>, vector<8x8xf32> -> vector<8x8xf32>
    %c0_58 = arith.constant 0 : index
    %c48_59 = arith.constant 48 : index
    %132 = vector.load %arg8[%c0_58, %c48_59] : memref<8x64xf32, #tpu.memory_space<vmem>>, vector<8x8xf32>
    tpu.vector_store %arg8[%c0_58, %c48_59], %131 {strides = array<i32>} : memref<8x64xf32, #tpu.memory_space<vmem>>, vector<8x8xf32>,
    %133 = vector.extract_strided_slice %6 {offsets = [0, 56], sizes = [8, 8], strides = [1, 1]} : vector<24x128xf32> to vector<8x8xf32>
    %134 = vector.extract_strided_slice %6 {offsets = [8, 120], sizes = [16, 8], strides = [1, 1]} : vector<24x128xf32> to vector<16x8xf32>
    %cst_60 = arith.constant dense<0.000000e+00> : vector<8x16xf32>
    %135 = tpu.matmul %133, %134, %cst_60 {dimension_numbers = #tpu.dot_dimension_numbers<[1], [1], [0], [0], [0, 0, 1, 0], [], []>} : vector<8x8xf32>, vector<16x8xf32>, vector<8x16xf32> -> vector<8x16xf32>
    %cst_61 = arith.constant dense<0xFF800000> : vector<8xf32>
    %136 = vector.multi_reduction <maximumf>, %135, %cst_61 [1] : vector<8x16xf32> to vector<8xf32>
    %137 = vector.shape_cast %136 : vector<8xf32> to vector<8x1xf32>
    %138 = vector.broadcast %137 : vector<8x1xf32> to vector<8x16xf32>
    %139 = arith.subf %135, %138 : vector<8x16xf32>
    %140 = math.exp %139 : vector<8x16xf32>
    %cst_62 = arith.constant dense<0.000000e+00> : vector<8xf32>
    %141 = vector.multi_reduction <add>, %140, %cst_62 [1] : vector<8x16xf32> to vector<8xf32>
    %142 = vector.shape_cast %141 : vector<8xf32> to vector<8x1xf32>
    %143 = tpu.reciprocal %142 : vector<8x1xf32> -> vector<8x1xf32>
    %144 = vector.broadcast %143 : vector<8x1xf32> to vector<8x16xf32>
    %145 = arith.mulf %140, %144 : vector<8x16xf32>
    %c0_63 = arith.constant 0 : index
    %c0_64 = arith.constant 0 : index
    %c112 = arith.constant 112 : index
    %146 = vector.load %arg7[%c0_63, %c0_64, %c112] : memref<1x8x128xf32, #tpu.memory_space<vmem>>, vector<1x8x16xf32>
    %147 = vector.shape_cast %146 : vector<1x8x16xf32> to vector<8x16xf32>
    %148 = vector.shape_cast %145 : vector<8x16xf32> to vector<1x8x16xf32>
    tpu.vector_store %arg7[%c0_63, %c0_64, %c112], %148 {strides = array<i32>} : memref<1x8x128xf32, #tpu.memory_space<vmem>>, vector<1x8x16xf32>,
    %cst_65 = arith.constant dense<0.000000e+00> : vector<8x8xf32>
    %149 = tpu.matmul %145, %134, %cst_65 {dimension_numbers = #tpu.dot_dimension_numbers<[1], [0], [0], [1], [0, 0, 1, 1], [], []>} : vector<8x16xf32>, vector<16x8xf32>, vector<8x8xf32> -> vector<8x8xf32>
    %c0_66 = arith.constant 0 : index
    %c56 = arith.constant 56 : index
    %150 = vector.load %arg8[%c0_66, %c56] : memref<8x64xf32, #tpu.memory_space<vmem>>, vector<8x8xf32>
    tpu.vector_store %arg8[%c0_66, %c56], %149 {strides = array<i32>} : memref<8x64xf32, #tpu.memory_space<vmem>>, vector<8x8xf32>,
    %c0_67 = arith.constant 0 : index
    %c0_68 = arith.constant 0 : index
    %151 = vector.load %arg8[%c0_67, %c0_68] : memref<8x64xf32, #tpu.memory_space<vmem>>, vector<8x64xf32>
    %c0_69 = arith.constant 0 : index
    %c0_70 = arith.constant 0 : index
    %152 = vector.load %arg4[%c0_69, %c0_70] : memref<64x64xf32, #tpu.memory_space<vmem>>, vector<64x64xf32>
    %cst_71 = arith.constant dense<0.000000e+00> : vector<8x64xf32>
    %153 = tpu.matmul %151, %152, %cst_71 {dimension_numbers = #tpu.dot_dimension_numbers<[1], [0], [0], [1], [0, 0, 1, 1], [], []>} : vector<8x64xf32>, vector<64x64xf32>, vector<8x64xf32> -> vector<8x64xf32>
    %c0_72 = arith.constant 0 : index
    %c0_73 = arith.constant 0 : index
    %154 = vector.load %arg5[%c0_72, %c0_73] : memref<1x64xf32, #tpu.memory_space<vmem>>, vector<1x64xf32>
    %155 = vector.broadcast %154 : vector<1x64xf32> to vector<8x64xf32>
    %156 = arith.addf %153, %155 : vector<8x64xf32>
    %c0_74 = arith.constant 0 : index
    %c0_75 = arith.constant 0 : index
    %c0_76 = arith.constant 0 : index
    %157 = vector.load %arg6[%c0_74, %c0_75, %c0_76] : memref<1x8x64xf32, #tpu.memory_space<vmem>>, vector<1x8x64xf32>
    %158 = vector.shape_cast %157 : vector<1x8x64xf32> to vector<8x64xf32>
    %159 = vector.shape_cast %156 : vector<8x64xf32> to vector<1x8x64xf32>
    tpu.vector_store %arg6[%c0_74, %c0_75, %c0_76], %159 {strides = array<i32>} : memref<1x8x64xf32, #tpu.memory_space<vmem>>, vector<1x8x64xf32>,
    return
  }
  func.func @transform_0(%arg0: i32) -> (i32, i32, i32) {
    %c0_i32 = arith.constant 0 : i32
    %c0_i32_0 = arith.constant 0 : i32
    %c0_i32_1 = arith.constant 0 : i32
    return %arg0, %c0_i32, %c0_i32_0 : i32, i32, i32
  }
  func.func @transform_1(%arg0: i32) -> (i32, i32) {
    %c0_i32 = arith.constant 0 : i32
    %c0_i32_0 = arith.constant 0 : i32
    %c0_i32_1 = arith.constant 0 : i32
    return %c0_i32, %c0_i32_0 : i32, i32
  }
  func.func @transform_2(%arg0: i32) -> (i32, i32) {
    %c0_i32 = arith.constant 0 : i32
    %c0_i32_0 = arith.constant 0 : i32
    %c0_i32_1 = arith.constant 0 : i32
    return %c0_i32, %c0_i32_0 : i32, i32
  }
  func.func @transform_3(%arg0: i32) -> (i32, i32) {
    %c0_i32 = arith.constant 0 : i32
    %c0_i32_0 = arith.constant 0 : i32
    %c0_i32_1 = arith.constant 0 : i32
    return %c0_i32, %c0_i32_0 : i32, i32
  }
  func.func @transform_4(%arg0: i32) -> (i32, i32) {
    %c0_i32 = arith.constant 0 : i32
    %c0_i32_0 = arith.constant 0 : i32
    %c0_i32_1 = arith.constant 0 : i32
    return %c0_i32, %c0_i32_0 : i32, i32
  }
  func.func @transform_5(%arg0: i32) -> (i32, i32, i32) {
    %c0_i32 = arith.constant 0 : i32
    %c0_i32_0 = arith.constant 0 : i32
    %c0_i32_1 = arith.constant 0 : i32
    return %arg0, %c0_i32, %c0_i32_0 : i32, i32, i32
  }
  func.func @transform_6(%arg0: i32) -> (i32, i32, i32) {
    %c0_i32 = arith.constant 0 : i32
    %c0_i32_0 = arith.constant 0 : i32
    %c0_i32_1 = arith.constant 0 : i32
    return %arg0, %c0_i32, %c0_i32_0 : i32, i32, i32
  }
}

</mosaic_0001>

<bundles_post_ra>
// kernel: tpu_custom_call.1
= control target key start
LH: loop header
LB: loop body
LE: loop exit
PB: predicated region body
PF: predicated region fallthrough
CT: control target
= control target key end

     0   :  { %12 = vsyncpa [#allocation4], 0  ;;  %s3368_s0 = inlined_call_operand.hbm [shape: f32[2,24,64], index: 0, kind: input, shape index: {}]   ;;  %s3369_s1 = inlined_call_operand.hbm [shape: f32[64,128], index: 1, kind: input, shape index: {}]   ;;  %s3370_s2 = inlined_call_operand.vmem [shape: f32[1,128], index: 2, kind: input, shape index: {}]   ;;  %s3371_s3 = inlined_call_operand.hbm [shape: f32[64,64], index: 3, kind: input, shape index: {}]   ;;  %s3372_s4 = inlined_call_operand.vmem [shape: f32[1,64], index: 4, kind: input, shape index: {}]   ;;  %s3373_s5 = inlined_call_operand.hbm [shape: f32[2,8,64], index: 5, kind: output, shape index: {0}]   ;;  %s3374_s6 = inlined_call_operand.hbm [shape: f32[2,8,128], index: 6, kind: output, shape index: {1}]  }
   0x1   :  { %14 = vsyncpa [#allocation4 + $0x1], 0 }
   0x2   :  { %15 = vsyncpa [#allocation7], 0 }
   0x3   :  { %16 = vsyncpa [#allocation5], 0 }
   0x4   :  { %18 = vsyncpa [#allocation5 + $0x1], 0 }
   0x5   :  { %19 = vsyncpa [#allocation11], 0 }
   0x6   :  { %21 = vsyncpa [#allocation11 + $0x1], 0  ;;  %s2863_s21 = smov 0   ;;  %s2865_s22 = smov 0  }
   0x7   :  { %s2867_s23 = smov 0   ;;  %s2869_s24 = smov 0  }
   0x8 LB: > { %s2884_s25 = sadd.s32 4294967295, %s2801_s24   ;;  %s2087_s26 = sadd.s32 4294967294, %s2801_s24   ;;  %s2801_s24 = sphi %s2869_s24, %s3400_s24   ;;  %s2797_s23 = sphi %s2867_s23, %s3399_s23   ;;  %s2793_s22 = sphi %s2865_s22, %s3398_s22   ;;  %s2789_s21 = sphi %s2863_s21, %s3397_s21  }
   0x9   : > { %p47_p0 = scmp.ne.s32.totalorder %s2793_s22, %s2789_s21  ;;  %p3375_p1 = scmp.eq.s32.totalorder %s2884_s25, 0 }
   0xa   : > { %p161_p3 = scmp.eq.s32.totalorder %s2087_s26, 1  ;;  %p2088_p5 = scmp.ge.s32.totalorder %s2801_s24, 1 }
   0xb   : > { %p2893_p4 = por %p3375_p1, %p47_p0  ;;  %p194_p7 = scmp.lt.s32.totalorder %s2801_s24, 3 }
   0xc   : > { %p2898_p6 = por %p161_p3, %p47_p0  ;;  %s2803_s30 = smov [#allocation6]  }
   0xd   : > { %s3380_s27 = scalar_select %p2893_p4, 1, 0 }
   0xe   : > { %s3381_s28 = scalar_select %p2898_p6, 1, 0 }
   0xf   : > { %p2903_p8 = pnand %p2088_p5, %p194_p7  ;;  %s206_s7 = sshll.u32 %s2803_s30, 4  ;;  %s2907_s7 = int_to_ptr.vmem [resolvable:$true] %s206_s7 }
  0x10   : > { %s2804_s9 = smov [#allocation8]   ;;  %s2613_s13 = scalar_lea.hbm %s3369_s1, 1024 }
  0x11   : > { %p2463_p9 = pneg %p2903_p8  ;;  %s222_s10 = sshll.u32 %s2804_s9, 4  ;;  %s2918_s10 = int_to_ptr.vmem [resolvable:$true] %s222_s10 }
  0x12   : > { %p2614_p12 = scmp.ne.s32.totalorder %s3369_s1, %s2613_s13  ;;  %p2620_p5 = scmp.lt.u32.totalorder %s2613_s13, %s3369_s1 }
  0x13   : > { %p2914_p11 = pnand %p2463_p9, %p3375_p1 }
  0x15   : > { %p2615_p13 = pneg %p2914_p11 }
  0x17   : > { %p2616_p0 = pnand %p2615_p13, %p2614_p12 }
  0x19   : > { %p2617_p3 = pneg %p2616_p0 }
  0x1b   : > { %p2622_p7 = pnand %p2620_p5, %p2617_p3 }
  0x1d   : > { %2625 = shalt.err (!%p2622_p7)
}
  0x1e   : > { %s2626_s18 = scalar_lea.vmem %s2907_s7, 1024  ;;  %p2634_p2 = scmp.lt.s32.totalorder %s2907_s7, %s2907_s7 }
  0x1f   : > { %p2627_p9 = scmp.ne.s32.totalorder %s2907_s7, %s2626_s18  ;;  %p2635_p12 = scmp.lt.s32.totalorder %s2626_s18, %s2626_s18 }
  0x21   : > { %p2629_p10 = pnand %p2627_p9, %p2615_p13  ;;  %p2636_p0 = por %p2635_p12, %p2634_p2 }
  0x23   : > { %p2630_p1 = pneg %p2629_p10 }
  0x25   : > { %p2637_p6 = pnand %p2636_p0, %p2630_p1 }
  0x27   : > { %2640 = shalt.err (!%p2637_p6)
}
  0x28   : > { %s3376_s19 = smov 128   ;;  %s3377_s20 = smov 8  }
  0x29   : > { %2466 = dma.hbm_to_vmem [thread:$0]  (!%p2914_p11), %s3369_s1, 1024, %s2907_s7, [#allocation7], %s3376_s19, %s3376_s19, %s3377_s20  }
  0x2a   : > { %s2641_s12 = scalar_lea.hbm %s3371_s3, 1024 }
  0x2b   : > { %p2642_p1 = scmp.ne.s32.totalorder %s3371_s3, %s2641_s12  ;;  %p2648_p10 = scmp.lt.u32.totalorder %s2641_s12, %s3371_s3 }
  0x2d   : > { %p2644_p2 = pnand %p2642_p1, %p2615_p13 }
  0x2f   : > { %p2645_p6 = pneg %p2644_p2 }
  0x31   : > { %p2650_p3 = pnand %p2648_p10, %p2645_p6 }
  0x33   : > { %2653 = shalt.err (!%p2650_p3)
}
  0x34   : > { %s2654_s7 = scalar_lea.vmem %s2918_s10, 1024  ;;  %p2662_p12 = scmp.lt.s32.totalorder %s2918_s10, %s2918_s10 }
  0x35   : > { %p2655_p5 = scmp.ne.s32.totalorder %s2918_s10, %s2654_s7  ;;  %p2663_p0 = scmp.lt.s32.totalorder %s2654_s7, %s2654_s7 }
  0x37   : > { %p2657_p7 = pnand %p2655_p5, %p2615_p13  ;;  %p2664_p1 = por %p2663_p0, %p2662_p12 }
  0x39   : > { %p2658_p9 = pneg %p2657_p7 }
  0x3b   : > { %p2665_p2 = pnand %p2664_p1, %p2658_p9 }
  0x3d   : > { %2668 = shalt.err (!%p2665_p2)
}
  0x3e   : > { %2469 = dma.hbm_to_vmem [thread:$0]  (!%p2914_p11), %s3371_s3, 1024, %s2918_s10, [#allocation7], %s3376_s19, %s3376_s19, %s3377_s20  }
  0x3f   : > { %s2979_s8 = sadd.s32 1, %s2801_s24   ;;  %s34_s26 = sadd.s32 1, %s2797_s23 }
  0x40   : > { %s31_s30 = ssub.s32 %s2801_s24, %s2979_s8  ;;  %p41_p13 = scmp.ne.s32.totalorder %s2797_s23, %s2793_s22 }
  0x41   : > { %p32_p6 = scmp.eq.s32.totalorder %s31_s30, 0  ;;  %p42_p10 = scmp.eq.s32.totalorder %s2801_s24, 0 }
  0x42   : > { %p3384_p3 = scmp.eq.s32.totalorder %s2884_s25, 1  ;;  %p2483_p7 = scmp.lt.s32.totalorder %s2801_s24, 2 }
  0x43   : > { %s2995_s11 = scalar_select %p32_p6, %s2797_s23, %s34_s26  }
  0x44   : > { %p2989_p5 = por %p3384_p3, %p41_p13  ;;  %p43_p9 = por %p42_p10, %p41_p13 }
  0x45   : > { %s239_s12 = sand.u32 1, %s2797_s23   ;;  %s2447_s10 = smul.u32 384, %s2801_s24 }
  0x46   : > { %s3385_s9 = scalar_select %p2989_p5, 1, 0 }
  0x47   : > { %s2446_s13 = smul.u32 24, %s239_s12  ;;  %p2999_p11 = pnand %p2483_p7, %p43_p9 }
  0x48   : > { %s3006_s7 = scalar_lea.hbm %s3368_s0, %s2447_s10  ;;  %s3010_s26 = scalar_lea.sflag [#allocation4], %s239_s12 }
  0x49   : > { %s243_s17 = scalar_lea.vmem [#allocation3], %s2446_s13  ;;  %s2669_s30 = scalar_lea.hbm %s3006_s7, 384 }
  0x4a   : > { %s250_s18 = sshll.u32 %s243_s17, 4  ;;  %p2670_p12 = scmp.ne.s32.totalorder %s3006_s7, %s2669_s30  ;;  %s3008_s18 = int_to_ptr.vmem [resolvable:$true] %s250_s18 }
  0x4b   : > { %p2671_p0 = pneg %p2999_p11  ;;  %s2674_s16 = scalar_lea.hbm %s3368_s0, 768 }
  0x4c   : > { %p2675_p13 = scmp.lt.u32.totalorder %s3006_s7, %s3368_s0  ;;  %p2676_p6 = scmp.lt.u32.totalorder %s2674_s16, %s2669_s30 }
  0x4d   : > { %p2672_p1 = pnand %p2671_p0, %p2670_p12  ;;  %p2678_p3 = scmp.lt.u32.totalorder %s2669_s30, %s3006_s7 }
  0x4e   : > { %p2677_p10 = por %p2676_p6, %p2675_p13 }
  0x4f   : > { %p2673_p2 = pneg %p2672_p1 }
  0x50   : > { %p2679_p7 = por %p2678_p3, %p2677_p10 }
  0x52   : > { %p2680_p9 = pnand %p2679_p7, %p2673_p2 }
  0x54   : > { %2683 = shalt.err (!%p2680_p9)
}
  0x55   : > { %s2684_s12 = scalar_lea.vmem %s3008_s18, 384  ;;  %s2807_s13 = smov [#allocation3]  }
  0x56   : > { %p2685_p12 = scmp.ne.s32.totalorder %s3008_s18, %s2684_s12  ;;  %s2689_s17 = sshll.u32 %s2807_s13, 4  ;;  %s2690_s17 = int_to_ptr.vmem [resolvable:$false] %s2689_s17 }
  0x57   : > { %s2691_s19 = scalar_lea.vmem %s2690_s17, 768  ;;  %p2692_p4 = scmp.lt.s32.totalorder %s3008_s18, %s2690_s17 }
  0x58   : > { %p2687_p1 = pnand %p2685_p12, %p2671_p0  ;;  %p2693_p13 = scmp.lt.s32.totalorder %s2691_s19, %s2684_s12 }
  0x5a   : > { %p2688_p5 = pneg %p2687_p1  ;;  %p2694_p6 = por %p2693_p13, %p2692_p4 }
  0x5c   : > { %p2695_p10 = pnand %p2694_p6, %p2688_p5 }
  0x5e   : > { %2698 = shalt.err (!%p2695_p10)
}
  0x5f   : > { %s3387_s20 = smov 8   ;;  %s3388_s30 = smov 128  }
  0x60   : > { %2473 = dma.hbm_to_vmem [thread:$0]  (!%p2999_p11), %s3006_s7, 384, %s3008_s18, %s3010_s26, %s3388_s30, %s3388_s30, %s3387_s20  }
  0x61   : > { %262 = sbr.rel (%p2903_p8) target bundleno = 4248 (0x1098), region = 40  ;;  %s3044_s10 = sand.u32 (!%p2903_p8), 1, %s2793_s22  }
  0x62   : > { %s2448_s15 = smul.u32 (!%p2903_p8), 24, %s3044_s10  ;;  %s265_s16 = scalar_lea.sflag (!%p2903_p8), [#allocation4], %s3044_s10 }
  0x63   : > { %p3389_p4 = scmp.ne.s32.totalorder (!%p2903_p8), %s3380_s27, 0 }
  0x64   : > { %s3048_s12 = scalar_lea.vmem (!%p2903_p8), [#allocation3], %s2448_s15 }
  0x68   : > { %2772 = dma.done.wait (%p3389_p4), %s265_s16, 384  }
  0x69   : > { %2774 = vsyncadd (%p3389_p4), %s265_s16, 4294966912  ;;  %p3390_p5 = scmp.eq.s32.totalorder %s2884_s25, 0 }
  0x6b   : > { %2776 = dma.done.wait (%p3390_p5), [#allocation7], 2048   ;;  %p3391_p8 = pmov %p3390_p5 }
  0x6c   : > { %v2808_v0 = vmov 0.0|0.0   ;;  %vm2809_vm0 = vmmov 0   ;;  %v2810_v1 = vmov 0.0   ;;  %v313_v2 = vld [vmem:[#allocation6] sm:$0xff]  ;;  %v314_v3 = vld [vmem:[#allocation6 + $0x8] sm:$0xff]  ;;  %v315_v4 = vld [vmem:[#allocation6 + $0x10] sm:$0xff] }
  0x6d   : > { %2778 = vsyncadd (%p3391_p8), [#allocation7], 4294965248  ;;  %2366 = vmatprep.subr.bf16.mxu0 %v2808_v0  ;;  %2226 = vmatprep.mubr.msk.f32.mxu0 %vm2809_vm0, %v2810_v1  ;;  %v2367_v5 = vpack.c.bf16 %v314_v3, %v313_v2  ;;  %v316_v6 = vld [vmem:[#allocation6 + $0x18] sm:$0xff]  ;;  %v317_v8 = vld [vmem:[#allocation6 + $0x20] sm:$0xff]  ;;  %vm328_vm1 = vcmask 523264   ;;  %s2811_s14 = smov 56  }
  0x6e   : > { %2382 = vmatprep.subr.bf16.mxu1 %v2808_v0  ;;  %2246 = vmatprep.mubr.msk.f32.mxu1 %vm2809_vm0, %v2810_v1  ;;  %v2370_v7 = vpack.c.bf16 %v316_v6, %v315_v4  ;;  %v318_v9 = vld [vmem:[#allocation6 + $0x28] sm:$0xff]  ;;  %v319_v11 = vld [vmem:[#allocation6 + $0x30] sm:$0xff]  ;;  %v320_v12 = vld [vmem:[#allocation6 + $0x38] sm:$0xff]  ;;  %s2812_s7 = smov 64   ;;  %s2813_s18 = smov 48   ;;  %vm424_vm2 = vcmask 64512  }
  0x6f   : > { %2368 = vmatpush3.bf16.msra.mxu0 %v2367_v5  ;;  %v2373_v10 = vpack.c.bf16 %v318_v9, %v317_v8  ;;  %v2376_v13 = vpack.c.bf16 %v320_v12, %v319_v11  ;;  %v310_v14 = vld [vmem:[%s3048_s12] sm:$0xff]  ;;  %v311_v15 = vld [vmem:[%s3048_s12 + $0x8] sm:$0xff]  ;;  %v312_v16 = vld [vmem:[%s3048_s12 + $0x10] sm:$0xff]  ;;  %s2814_s26 = smov 120   ;;  %vm502_vm4 = vcmask 130048   ;;  %s2815_s13 = smov 104  }
  0x70   : > { %2369 = vmatprep.subr.bf16.mxu0 %v2808_v0  ;;  %v2098_v21 = vld [vmem:[%s3370_s2] ss:$0 sm:$0xff]  ;;  %vm3096_vm3 = vmpackc.low %vm424_vm2, %vm424_vm2  ;;  %s2816_s17 = smov 112   ;;  %s2817_s19 = smov 40   ;;  %vm768_vm5 = vcmask 130112   ;;  %vm947_vm6 = vcmask 195712  }
  0x71   : > { %s2096_s20 = sshll.u32 %s3044_s10, 3  ;;  %s2818_s15 = smov 32   ;;  %vm1126_vm7 = vcmask 261312   ;;  %vm1305_vm8 = vcmask 326912   ;;  %vm1484_vm9 = vcmask 392512   ;;  %vm1663_vm10 = vcmask 458112  }
  0x72   : > { %s3134_s30 = scalar_lea.vmem [#allocation10], %s2096_s20  ;;  %s2819_s16 = smov 96   ;;  %vm688_vm11 = vcmask 261248   ;;  %vm1842_vm12 = vcmask 523712   ;;  %vm867_vm13 = vcmask 392448   ;;  %vm1046_vm14 = vcmask 523648  }
  0x73   : > { %2371 = vmatpush3.bf16.msra.mxu0 %v2370_v7  ;;  %s2820_s12 = smov 88   ;;  %s2821_s27 = smov 24   ;;  %vm1225_vm15 = vcmask 654848  }
  0x74   : > { %2372 = vmatprep.subr.bf16.mxu0 %v2808_v0  ;;  %s2822_s29 = smov 80   ;;  %p3394_p0 = scmp.ne.s32.totalorder %s3385_s9, 0 }
  0x77   : > { %2374 = vmatpush3.bf16.msra.mxu0 %v2373_v10 }
  0x78   : > { %2375 = vmatprep.subr.bf16.mxu0 %v2808_v0 }
  0x7b   : > { %2377 = vmatpush3.bf16.msra.mxu0 %v2376_v13 }
  0x7c   : > { %2378 = vmatprep.subr.bf16.mxu0 %v2808_v0 }
  0x7e   : > { %2227 = vmatmul.mubr.msk.f32.vlgmr.msra.gmra.mrb[0].mxu0 %vm328_vm1, %v310_v14 }
  0x7f   : > { %2229 = vmatprep.mubr.msk.f32.mxu0 %vm2809_vm0, %v2810_v1 }
  0x82   : > { %2230 = vmatmul.mubr.msk.f32.gmra.mrb[2].mxu0 %vm328_vm1, %v311_v15 }
  0x83   : > { %2232 = vmatprep.mubr.msk.f32.mxu0 %vm2809_vm0, %v2810_v1 }
  0x86   : > { %2233 = vmatmul.mubr.msk.f32.gmra.mrb[4].mxu0 %vm328_vm1, %v312_v16 }
  0x87   : > { %2239 = vmatprep.mubr.msk.f32.mxu0 %vm2809_vm0, %v2810_v1 }
 0x151   : > { %v404_v17 = vpop.f32.mrb[0].mxu0 }
 0x152   : > { %v2228_v18 = vpop.f32.mrb[1].mxu0  ;;  %v3091_v27 = vadd.f32 %v2098_v21, %v404_v17 }
 0x155   : > { %v409_v19 = vpop.f32.mrb[2].mxu0 }
 0x156   : > { %v2231_v20 = vpop.f32.mrb[3].mxu0  ;;  %v410_v23 = vadd.f32 %v2098_v21, %v409_v19 }
 0x159   : > { %v414_v22 = vpop.f32.mrb[4].mxu0 }
 0x15a   : > { %v415_v24 = vadd.f32 %v2098_v21, %v414_v22  ;;  %v2234_v25 = vpop.f32.mrb[5].mxu0 }
 0x15c   : > { %v3083_v26 = vpack.i.bf16 %v415_v24, %v410_v23 }
 0x15e   : > { %2547 = vrot.lane.b32.xlu1 %v3083_v26, %s2811_s14  ;;  %2542 = vrot.lane.b32.xlu0 %v3083_v26, %s2812_s7 }
 0x162   : > { %2552 = vrot.lane.b32.xlu1 %v3083_v26, %s2813_s18 }
 0x166   : > { %591 = vrot.lane.b32.xlu1 %v3091_v27, %s2814_s26  ;;  %s2823_s26 = smov 16  }
 0x1d0   : > { %v2548_v28 = vpop.permute.xlu1 %2547  ;;  %v2543_v29 = vpop.permute.xlu0 %2542 }
 0x1d1   : > { %v2545_v30 = vunpack.i.h.bf16 %v2543_v29  ;;  %v2544_v31 = vunpack.i.l.bf16 %v2543_v29  ;;  %v2550_v50 = vunpack.i.h.bf16 %v2548_v28  ;;  %v2549_v51 = vunpack.i.l.bf16 %v2548_v28 }
 0x1d3   : > { %v2379_v33 = vpack.c.bf16 %v2545_v30, %v2544_v31  ;;  %v2386_v57 = vpack.c.bf16 %v2550_v50, %v2549_v51 }
 0x1d4   : > { %v2553_v34 = vpop.permute.xlu1 %2552 }
 0x1d5   : > { %2381 = vmatpush3.bf16.xpose.msk.msra.mxu0 %vm3096_vm3, %v2379_v33  ;;  %2384 = vmatpush3.bf16.msra.mxu1 %v2379_v33  ;;  %v2555_v35 = vunpack.i.h.bf16 %v2553_v34  ;;  %v2554_v36 = vunpack.i.l.bf16 %v2553_v34 }
 0x1d6   : > { %2392 = vmatprep.subr.bf16.mxu0 %v2808_v0  ;;  %2385 = vmatprep.subr.bf16.mxu1 %v2808_v0 }
 0x1d7   : > { %v3104_v37 = vpack.c.bf16 %v2555_v35, %v2554_v36 }
 0x1d8   : > { %v592_v46 = vpop.permute.xlu1 %591 }
 0x1dc   : > { %2240 = vmatmul.mubr.msk.f32.vlgmr.msra.gmra.mrb[6].mxu0 %vm424_vm2, %v3091_v27 }
 0x1dd   : > { %2395 = vmatpush3.bf16.xpose.msk.msra.mxu0 %vm3096_vm3, %v3104_v37  ;;  %2267 = vmatprep.mubr.msk.f32.mxu0 %vm2809_vm0, %v2810_v1 }
 0x1de   : > { %2399 = vmatprep.subr.bf16.mxu0 %v2808_v0 }
 0x2af   : > { %v498_v38 = vpop.f32.mrb[6].mxu0 }
 0x2b0   : > { %v2241_v39 = vpop.f32.mrb[7].mxu0  ;;  %v503_v40 = vsel %vm502_vm4, %v498_v38, -inf }
 0x2b1   : > { %504 = vmax.xlane.f32.xlu0 %v503_v40 }
 0x2c7   : > { %949 = vrot.lane.b32.xlu0 %v3091_v27, %s2815_s13  ;;  %s2824_s13 = smov 72  }
 0x33e   : > { %v505_v41 = vpop.xlane.xlu0 %504 }
 0x33f   : > { %v506_v42 = vsub.f32 %v498_v38, %v505_v41 }
 0x341   : > { %v507_v43 = vmul.f32 1.442695, %v506_v42 }
 0x342   : > { %v950_v58 = vpop.permute.xlu0 %949 }
 0x343   : > { %2581 = vpow2.f32 %v507_v43 }
 0x34d   : > { %v2582_v44 = vpop.eup %2581 }
 0x34e   : > { %v509_v45 = vsel %vm502_vm4, %v2582_v44, 0.0 }
 0x34f   : > { %510 = vadd.xlane.f32.xlu1 %v509_v45 }
 0x360   : > { %770 = vrot.lane.b32.xlu1 %v3091_v27, %s2816_s17 }
 0x364   : > { %2557 = vrot.lane.b32.xlu1 %v3083_v26, %s2817_s19 }
 0x3dc   : > { %v511_v47 = vpop.xlane.xlu1 %510 }
 0x3dd   : > { %2583 = vrcp.f32 %v511_v47 }
 0x3e0   : > { %v771_v48 = vpop.permute.xlu1 %770 }
 0x3e1   : > { %2268 = vmatmul.mubr.msk.f32.vlgmr.msra.gmra.mrb[8].mxu0 %vm424_vm2, %v771_v48 }
 0x3e2   : > { %2281 = vmatprep.mubr.msk.f32.mxu0 %vm2809_vm0, %v2810_v1 }
 0x3e4   : > { %v2558_v49 = vpop.permute.xlu1 %2557 }
 0x3e5   : > { %v2560_v52 = vunpack.i.h.bf16 %v2558_v49  ;;  %v2559_v53 = vunpack.i.l.bf16 %v2558_v49 }
 0x3e7   : > { %v2584_v54 = vpop.eup %2583  ;;  %v3125_v55 = vpack.c.bf16 %v2560_v52, %v2559_v53 }
 0x3e8   : > { %v513_v56 = vmul.f32 %v2584_v54, %v2582_v44 }
 0x3e9   : > { %2402 = vmatpush3.bf16.xpose.msk.msra.mxu0 %vm3096_vm3, %v3125_v55 }
 0x3ea   : > { %2247 = vmatmul.mubr.msk.f32.vlgmr.msra.gmra.mrb[0].mxu1 %vm502_vm4, %v513_v56  ;;  %2410 = vmatprep.subr.bf16.mxu0 %v2808_v0  ;;  %514 = vst.msk [vmem:[%s3134_s30] sm:$0xff] %vm502_vm4, %v513_v56 }
 0x3eb   : > { %2388 = vmatpush3.bf16.xpose.msk.msra.mxu1 %vm3096_vm3, %v2386_v57  ;;  %2253 = vmatprep.mubr.msk.f32.mxu1 %vm2809_vm0, %v2810_v1 }
 0x3ec   : > { %2389 = vmatprep.subr.bf16.mxu1 %v2808_v0 }
 0x3f0   : > { %2282 = vmatmul.mubr.msk.f32.vlgmr.msra.gmra.mrb[10].mxu0 %vm424_vm2, %v950_v58 }
 0x3f1   : > { %2302 = vmatprep.mubr.msk.f32.mxu0 %vm2809_vm0, %v2810_v1 }
 0x3f2   : > { %2254 = vmatmul.mubr.msk.f32.vlgmr.msra.gmra.mrb[2].mxu1 %vm424_vm2, %v592_v46 }
 0x3f3   : > { %2391 = vmatpush3.bf16.msra.mxu1 %v2386_v57  ;;  %2260 = vmatprep.mubr.msk.f32.mxu1 %vm2809_vm0, %v2810_v1 }
 0x3f4   : > { %2396 = vmatprep.subr.bf16.mxu1 %v2808_v0 }
 0x4b4   : > { %v848_v59 = vpop.f32.mrb[8].mxu0 }
 0x4b5   : > { %v2269_v60 = vpop.f32.mrb[9].mxu0  ;;  %v852_v61 = vsel %vm502_vm4, %v848_v59, -inf }
 0x4b6   : > { %853 = vmax.xlane.f32.xlu0 %v852_v61 }
 0x4bd   : > { %v586_v62 = vpop.f32.mrb[0].mxu1 }
 0x4be   : > { %590 = vst.msk [vmem:[#allocation2] sm:$0xff] %vm424_vm2, %v586_v62  ;;  %v2248_v63 = vpop.f32.mrb[1].mxu1 }
 0x4c3   : > { %v1027_v2 = vpop.f32.mrb[10].mxu0 }
 0x4c4   : > { %v2283_v3 = vpop.f32.mrb[11].mxu0  ;;  %v1031_v7 = vsel %vm502_vm4, %v1027_v2, -inf }
 0x4c5   : > { %v669_v4 = vpop.f32.mrb[2].mxu1 }
 0x4c6   : > { %v2255_v5 = vpop.f32.mrb[3].mxu1  ;;  %v673_v6 = vsel %vm502_vm4, %v669_v4, -inf }
 0x4c7   : > { %674 = vmax.xlane.f32.xlu1 %v673_v6 }
 0x4cb   : > { %1032 = vmax.xlane.f32.xlu1 %v1031_v7 }
 0x4cc   : > { %2562 = vrot.lane.b32.xlu0 %v3083_v26, %s2818_s15 }
 0x543   : > { %v854_v8 = vpop.xlane.xlu0 %853 }
 0x544   : > { %v855_v13 = vsub.f32 %v848_v59, %v854_v8 }
 0x546   : > { %v856_v16 = vmul.f32 1.442695, %v855_v13 }
 0x547   : > { %v2563_v9 = vpop.permute.xlu0 %2562 }
 0x548   : > { %v2565_v10 = vunpack.i.h.bf16 %v2563_v9  ;;  %v2564_v11 = vunpack.i.l.bf16 %v2563_v9 }
 0x54a   : > { %v2407_v12 = vpack.c.bf16 %v2565_v10, %v2564_v11 }
 0x54c   : > { %2412 = vmatpush3.bf16.msra.mxu0 %v2407_v12 }
 0x54d   : > { %2413 = vmatprep.subr.bf16.mxu0 %v2808_v0 }
 0x554   : > { %v675_v14 = vpop.xlane.xlu1 %674 }
 0x555   : > { %v676_v15 = vsub.f32 %v669_v4, %v675_v14 }
 0x557   : > { %v677_v17 = vmul.f32 1.442695, %v676_v15 }
 0x558   : > { %v1033_v18 = vpop.xlane.xlu1 %1032 }
 0x559   : > { %2585 = vpow2.f32 %v677_v17  ;;  %v1034_v19 = vsub.f32 %v1027_v2, %v1033_v18 }
 0x55a   : > { %2587 = vpow2.f32 %v856_v16 }
 0x55b   : > { %v1035_v20 = vmul.f32 1.442695, %v1034_v19 }
 0x55d   : > { %2589 = vpow2.f32 %v1035_v20 }
 0x563   : > { %v2586_v21 = vpop.eup %2585 }
 0x564   : > { %v679_v22 = vsel %vm502_vm4, %v2586_v21, 0.0  ;;  %v2588_v23 = vpop.eup %2587 }
 0x565   : > { %680 = vadd.xlane.f32.xlu1 %v679_v22  ;;  %v858_v24 = vsel %vm502_vm4, %v2588_v23, 0.0 }
 0x567   : > { %v2590_v25 = vpop.eup %2589 }
 0x568   : > { %v1037_v28 = vsel %vm502_vm4, %v2590_v25, 0.0 }
 0x569   : > { %859 = vadd.xlane.f32.xlu1 %v858_v24 }
 0x56d   : > { %1038 = vadd.xlane.f32.xlu1 %v1037_v28 }
 0x57e   : > { %1128 = vrot.lane.b32.xlu1 %v3091_v27, %s2819_s16 }
 0x5f2   : > { %v681_v29 = vpop.xlane.xlu1 %680 }
 0x5f3   : > { %2591 = vrcp.f32 %v681_v29 }
 0x5f6   : > { %v860_v30 = vpop.xlane.xlu1 %859 }
 0x5f7   : > { %2593 = vrcp.f32 %v860_v30 }
 0x5fa   : > { %v1039_v31 = vpop.xlane.xlu1 %1038 }
 0x5fb   : > { %2595 = vrcp.f32 %v1039_v31 }
 0x5fd   : > { %v2592_v33 = vpop.eup %2591 }
 0x5fe   : > { %v3162_v34 = vmul.f32 %v2592_v33, %v2586_v21 }
 0x600   : > { %2261 = vmatmul.mubr.msk.f32.vlgmr.msra.gmra.mrb[4].mxu1 %vm502_vm4, %v3162_v34 }
 0x601   : > { %v2594_v35 = vpop.eup %2593  ;;  %2398 = vmatpush3.bf16.msra.mxu1 %v3104_v37  ;;  %2274 = vmatprep.mubr.msk.f32.mxu1 %vm2809_vm0, %v2810_v1  ;;  %v1129_v37 = vpop.permute.xlu1 %1128 }
 0x602   : > { %v3169_v36 = vmul.f32 %v2594_v35, %v2588_v23  ;;  %2403 = vmatprep.subr.bf16.mxu1 %v2808_v0 }
 0x604   : > { %2275 = vmatmul.mubr.msk.f32.vlgmr.msra.gmra.mrb[6].mxu1 %vm502_vm4, %v3169_v36 }
 0x605   : > { %v2596_v38 = vpop.eup %2595  ;;  %2405 = vmatpush3.bf16.msra.mxu1 %v3125_v55  ;;  %2288 = vmatprep.mubr.msk.f32.mxu1 %vm2809_vm0, %v2810_v1 }
 0x606   : > { %v3177_v39 = vmul.f32 %v2596_v38, %v2590_v25  ;;  %2406 = vmatprep.subr.bf16.mxu1 %v2808_v0 }
 0x608   : > { %2289 = vmatmul.mubr.msk.f32.vlgmr.msra.gmra.mrb[8].mxu1 %vm502_vm4, %v3177_v39 }
 0x609   : > { %2295 = vmatprep.mubr.msk.f32.mxu1 %vm2809_vm0, %v2810_v1 }
 0x60e   : > { %2409 = vmatpush3.bf16.xpose.msk.msra.mxu1 %vm3096_vm3, %v2407_v12 }
 0x60f   : > { %2417 = vmatprep.subr.bf16.mxu1 %v2808_v0 }
 0x615   : > { %2296 = vmatmul.mubr.msk.f32.vlgmr.msra.gmra.mrb[10].mxu1 %vm424_vm2, %v1129_v37 }
 0x616   : > { %2316 = vmatprep.mubr.msk.f32.mxu1 %vm2809_vm0, %v2810_v1 }
 0x6d3   : > { %v3190_v40 = vpop.f32.mrb[4].mxu1 }
 0x6d4   : > { %v2262_v41 = vpop.f32.mrb[5].mxu1 }
 0x6d7   : > { %v3192_v42 = vpop.f32.mrb[6].mxu1 }
 0x6d8   : > { %v2276_v43 = vpop.f32.mrb[7].mxu1 }
 0x6db   : > { %v3194_v44 = vpop.f32.mrb[8].mxu1 }
 0x6dc   : > { %v2290_v45 = vpop.f32.mrb[9].mxu1 }
 0x6e8   : > { %v1206_v46 = vpop.f32.mrb[10].mxu1 }
 0x6e9   : > { %v2297_v47 = vpop.f32.mrb[11].mxu1  ;;  %v1210_v48 = vsel %vm502_vm4, %v1206_v46, -inf }
 0x6ea   : > { %1211 = vmax.xlane.f32.xlu1 %v1210_v48 }
 0x6fb   : > { %1307 = vrot.lane.b32.xlu1 %v3091_v27, %s2820_s12  ;;  %s2825_s12 = smov 8  }
 0x777   : > { %v1212_v49 = vpop.xlane.xlu1 %1211 }
 0x778   : > { %v1213_v50 = vsub.f32 %v1206_v46, %v1212_v49 }
 0x77a   : > { %v1214_v51 = vmul.f32 1.442695, %v1213_v50 }
 0x77b   : > { %v1308_v61 = vpop.permute.xlu1 %1307 }
 0x77c   : > { %2597 = vpow2.f32 %v1214_v51 }
 0x786   : > { %v2598_v52 = vpop.eup %2597 }
 0x787   : > { %v1216_v53 = vsel %vm502_vm4, %v2598_v52, 0.0 }
 0x788   : > { %1217 = vadd.xlane.f32.xlu0 %v1216_v53 }
 0x79e   : > { %2567 = vrot.lane.b32.xlu0 %v3083_v26, %s2821_s27 }
 0x815   : > { %v1218_v54 = vpop.xlane.xlu0 %1217 }
 0x816   : > { %2599 = vrcp.f32 %v1218_v54 }
 0x819   : > { %v2568_v55 = vpop.permute.xlu0 %2567 }
 0x81a   : > { %v2570_v56 = vunpack.i.h.bf16 %v2568_v55  ;;  %v2569_v57 = vunpack.i.l.bf16 %v2568_v55 }
 0x81c   : > { %v2414_v58 = vpack.c.bf16 %v2570_v56, %v2569_v57  ;;  %v1845_v57 = vld [vmem:[#allocation8] sm:$0xff] }
 0x81e   : > { %2419 = vmatpush3.bf16.msra.mxu1 %v2414_v58 }
 0x81f   : > { %2420 = vmatprep.subr.bf16.mxu1 %v2808_v0 }
 0x820   : > { %v2600_v59 = vpop.eup %2599 }
 0x821   : > { %v3202_v60 = vmul.f32 %v2600_v59, %v2598_v52  ;;  %v1847_v59 = vld [vmem:[#allocation8 + $0x10] sm:$0xff] }
 0x823   : > { %2303 = vmatmul.mubr.msk.f32.vlgmr.msra.gmra.mrb[12].mxu0 %vm502_vm4, %v3202_v60 }
 0x824   : > { %2416 = vmatpush3.bf16.xpose.msk.msra.mxu0 %vm3096_vm3, %v2414_v58  ;;  %2309 = vmatprep.mubr.msk.f32.mxu0 %vm2809_vm0, %v2810_v1  ;;  %v1846_v58 = vld [vmem:[#allocation8 + $0x8] sm:$0xff] }
 0x825   : > { %2424 = vmatprep.subr.bf16.mxu0 %v2808_v0 }
 0x82b   : > { %2310 = vmatmul.mubr.msk.f32.vlgmr.msra.gmra.mrb[14].mxu0 %vm424_vm2, %v1308_v61  ;;  %v2435_v61 = vpack.c.bf16 %v1846_v58, %v1845_v57 }
 0x82c   : > { %2330 = vmatprep.mubr.msk.f32.mxu0 %vm2809_vm0, %v2810_v1 }
 0x8f6   : > { %v3214_v62 = vpop.f32.mrb[12].mxu0 }
 0x8f7   : > { %v2304_v63 = vpop.f32.mrb[13].mxu0 }
 0x8fe   : > { %v1385_v2 = vpop.f32.mrb[14].mxu0 }
 0x8ff   : > { %v2311_v3 = vpop.f32.mrb[15].mxu0  ;;  %v1389_v4 = vsel %vm502_vm4, %v1385_v2, -inf }
 0x900   : > { %1390 = vmax.xlane.f32.xlu1 %v1389_v4  ;;  %v1850_v3 = vld [vmem:[#allocation8 + $0x28] sm:$0xff] }
 0x911   : > { %1486 = vrot.lane.b32.xlu1 %v3091_v27, %s2822_s29 }
 0x98d   : > { %v1391_v5 = vpop.xlane.xlu1 %1390 }
 0x98e   : > { %v1392_v6 = vsub.f32 %v1385_v2, %v1391_v5  ;;  %v1849_v2 = vld [vmem:[#allocation8 + $0x20] sm:$0xff]  ;;  %v1852_v5 = vld [vmem:[#allocation8 + $0x38] sm:$0xff] }
 0x98f   : > { %v2441_v4 = vpack.c.bf16 %v1850_v3, %v1849_v2 }
 0x990   : > { %v1393_v7 = vmul.f32 1.442695, %v1392_v6 }
 0x991   : > { %v1487_v17 = vpop.permute.xlu1 %1486 }
 0x992   : > { %2601 = vpow2.f32 %v1393_v7 }
 0x99c   : > { %v2602_v8 = vpop.eup %2601 }
 0x99d   : > { %v1395_v9 = vsel %vm502_vm4, %v2602_v8, 0.0 }
 0x99e   : > { %1396 = vadd.xlane.f32.xlu0 %v1395_v9 }
 0x9b4   : > { %2572 = vrot.lane.b32.xlu0 %v3083_v26, %s2823_s26 }
 0xa2b   : > { %v1397_v10 = vpop.xlane.xlu0 %1396 }
 0xa2c   : > { %2603 = vrcp.f32 %v1397_v10 }
 0xa2f   : > { %v2573_v11 = vpop.permute.xlu0 %2572 }
 0xa30   : > { %v2575_v12 = vunpack.i.h.bf16 %v2573_v11  ;;  %v2574_v13 = vunpack.i.l.bf16 %v2573_v11 }
 0xa32   : > { %v2421_v14 = vpack.c.bf16 %v2575_v12, %v2574_v13 }
 0xa34   : > { %2426 = vmatpush3.bf16.msra.mxu0 %v2421_v14 }
 0xa35   : > { %2427 = vmatprep.subr.bf16.mxu0 %v2808_v0 }
 0xa36   : > { %v2604_v15 = vpop.eup %2603 }
 0xa37   : > { %v1399_v16 = vmul.f32 %v2604_v15, %v2602_v8 }
 0xa39   : > { %2317 = vmatmul.mubr.msk.f32.vlgmr.msra.gmra.mrb[12].mxu1 %vm502_vm4, %v1399_v16 }
 0xa3a   : > { %2423 = vmatpush3.bf16.xpose.msk.msra.mxu1 %vm3096_vm3, %v2421_v14  ;;  %2323 = vmatprep.mubr.msk.f32.mxu1 %vm2809_vm0, %v2810_v1 }
 0xa3b   : > { %2431 = vmatprep.subr.bf16.mxu1 %v2808_v0 }
 0xa41   : > { %2324 = vmatmul.mubr.msk.f32.vlgmr.msra.gmra.mrb[14].mxu1 %vm424_vm2, %v1487_v17 }
 0xa42   : > { %2344 = vmatprep.mubr.msk.f32.mxu1 %vm2809_vm0, %v2810_v1 }
 0xb0c   : > { %v1476_v18 = vpop.f32.mrb[12].mxu1 }
 0xb0d   : > { %v2318_v19 = vpop.f32.mrb[13].mxu1 }
 0xb14   : > { %v1564_v20 = vpop.f32.mrb[14].mxu1 }
 0xb15   : > { %v2325_v21 = vpop.f32.mrb[15].mxu1  ;;  %v1568_v22 = vsel %vm502_vm4, %v1564_v20, -inf }
 0xb16   : > { %1569 = vmax.xlane.f32.xlu1 %v1568_v22 }
 0xb27   : > { %1665 = vrot.lane.b32.xlu1 %v3091_v27, %s2824_s13 }
 0xba3   : > { %v1570_v23 = vpop.xlane.xlu1 %1569 }
 0xba4   : > { %v1571_v24 = vsub.f32 %v1564_v20, %v1570_v23 }
 0xba6   : > { %v1572_v25 = vmul.f32 1.442695, %v1571_v24 }
 0xba8   : > { %2605 = vpow2.f32 %v1572_v25 }
 0xbb2   : > { %v2606_v28 = vpop.eup %2605 }
 0xbb3   : > { %v1574_v29 = vsel %vm502_vm4, %v2606_v28, 0.0 }
 0xbb4   : > { %1575 = vadd.xlane.f32.xlu0 %v1574_v29 }
 0xbca   : > { %2577 = vrot.lane.b32.xlu0 %v3083_v26, %s2825_s12  ;;  %v1666_v26 = vpop.permute.xlu1 %1665 }
 0xc41   : > { %v1576_v30 = vpop.xlane.xlu0 %1575 }
 0xc42   : > { %2607 = vrcp.f32 %v1576_v30 }
 0xc45   : > { %v2578_v31 = vpop.permute.xlu0 %2577 }
 0xc46   : > { %v2580_v33 = vunpack.i.h.bf16 %v2578_v31  ;;  %v2579_v35 = vunpack.i.l.bf16 %v2578_v31 }
 0xc48   : > { %v2428_v38 = vpack.c.bf16 %v2580_v33, %v2579_v35 }
 0xc4a   : > { %2433 = vmatpush3.bf16.msra.mxu1 %v2428_v38 }
 0xc4b   : > { %2434 = vmatprep.subr.bf16.mxu1 %v2808_v0 }
 0xc4c   : > { %v2608_v27 = vpop.eup %2607 }
 0xc4d   : > { %v3238_v37 = vmul.f32 %v2608_v27, %v2606_v28 }
 0xc4f   : > { %2331 = vmatmul.mubr.msk.f32.vlgmr.msra.gmra.mrb[16].mxu0 %vm502_vm4, %v3238_v37 }
 0xc50   : > { %2430 = vmatpush3.bf16.xpose.msk.msra.mxu0 %vm3096_vm3, %v2428_v38  ;;  %2337 = vmatprep.mubr.msk.f32.mxu0 %vm2809_vm0, %v2810_v1  ;;  %vm1762_vm3 = vcmask 1048448  }
 0xc57   : > { %2338 = vmatmul.mubr.msk.f32.vlgmr.msra.gmra.mrb[18].mxu0 %vm424_vm2, %v1666_v26  ;;  %vm1583_vm2 = vcmask 917248  }
 0xd22   : > { %v1655_v41 = vpop.f32.mrb[16].mxu0 }
 0xd23   : > { %v2332_v43 = vpop.f32.mrb[17].mxu0 }
 0xd2a   : > { %v1743_v45 = vpop.f32.mrb[18].mxu0 }
 0xd2b   : > { %v2339_v46 = vpop.f32.mrb[19].mxu0  ;;  %v1747_v47 = vsel %vm502_vm4, %v1743_v45, -inf }
 0xd2c   : > { %1748 = vmax.xlane.f32.xlu1 %v1747_v47 }
 0xd3d   : > { %944 = vrot.lane.b32.xlu1 %v3192_v42, %s2823_s26 }
 0xd41   : > { %1123 = vrot.lane.b32.xlu1 %v3194_v44, %s2821_s27  ;;  %s2826_s27 = smov [#allocation10]  }
 0xd45   : > { %1481 = vrot.lane.b32.xlu1 %v1476_v18, %s2817_s19  ;;  %s1966_s19 = sshll.u32 %s3134_s30, 4  ;;  %s1967_s19 = int_to_ptr.vmem [resolvable:$true] %s1966_s19 }
 0xdb9   : > { %v1749_v32 = vpop.xlane.xlu1 %1748 }
 0xdba   : > { %v1750_v48 = vsub.f32 %v1743_v45, %v1749_v32 }
 0xdbc   : > { %v1751_v49 = vmul.f32 1.442695, %v1750_v48 }
 0xdbd   : > { %v945_v42 = vpop.permute.xlu1 %944 }
 0xdbe   : > { %2609 = vpow2.f32 %v1751_v49 }
 0xdc1   : > { %v1124_v52 = vpop.permute.xlu1 %1123 }
 0xdc5   : > { %v1482_v53 = vpop.permute.xlu1 %1481 }
 0xdc8   : > { %v2610_v50 = vpop.eup %2609 }
 0xdc9   : > { %v1753_v51 = vsel %vm502_vm4, %v2610_v50, 0.0 }
 0xdca   : > { %1754 = vadd.xlane.f32.xlu0 %v1753_v51 }
 0xde0   : > { %765 = vrot.lane.b32.xlu0 %v3190_v40, %s2825_s12 }
 0xde4   : > { %1302 = vrot.lane.b32.xlu0 %v3214_v62, %s2818_s15  ;;  %v1848_v62 = vld [vmem:[#allocation8 + $0x18] sm:$0xff] }
 0xde5   : > { %v2438_v63 = vpack.c.bf16 %v1848_v62, %v1847_v59 }
 0xde8   : > { %1660 = vrot.lane.b32.xlu0 %v1655_v41, %s2813_s18 }
 0xdec   : > { %685 = vrot.lane.b32.xlu0 %v3162_v34, %s2823_s26 }
 0xdf0   : > { %1043 = vrot.lane.b32.xlu0 %v3177_v39, %s2813_s18 }
 0xdf4   : > { %1401 = vrot.lane.b32.xlu0 %v1399_v16, %s2822_s29  ;;  %s2703_s29 = sshll.u32 %s2826_s27, 4  ;;  %s2704_s29 = int_to_ptr.vmem [resolvable:$false] %s2703_s29 }
 0xdf5   : > { %s2705_s26 = scalar_lea.vmem %s2704_s29, 256  ;;  %p2706_p7 = scmp.lt.s32.totalorder %s1967_s19, %s2704_s29 }
 0xe57   : > { %v1755_v44 = vpop.xlane.xlu0 %1754 }
 0xe58   : > { %2611 = vrcp.f32 %v1755_v44 }
 0xe5b   : > { %v766_v40 = vpop.permute.xlu0 %765 }
 0xe5c   : > { %769 = vst.msk [vmem:[#allocation2] sm:$0xff] %vm768_vm5, %v766_v40 }
 0xe5d   : > { %948 = vst.msk [vmem:[#allocation2] sm:$0xff] %vm947_vm6, %v945_v42 }
 0xe5e   : > { %1127 = vst.msk [vmem:[#allocation2] sm:$0xff] %vm1126_vm7, %v1124_v52 }
 0xe5f   : > { %v1303_v34 = vpop.permute.xlu0 %1302 }
 0xe60   : > { %1306 = vst.msk [vmem:[#allocation2] sm:$0xff] %vm1305_vm8, %v1303_v34 }
 0xe61   : > { %1485 = vst.msk [vmem:[#allocation2] sm:$0xff] %vm1484_vm9, %v1482_v53 }
 0xe62   : > { %v2612_v39 = vpop.eup %2611 }
 0xe63   : > { %v1661_v54 = vpop.permute.xlu0 %1660  ;;  %v1757_v55 = vmul.f32 %v2612_v39, %v2610_v50 }
 0xe64   : > { %1664 = vst.msk [vmem:[#allocation2] sm:$0xff] %vm1663_vm10, %v1661_v54 }
 0xe65   : > { %1759 = vrot.lane.b32.xlu0 %v1757_v55, %s2816_s17  ;;  %2345 = vmatmul.mubr.msk.f32.vlgmr.msra.gmra.mrb[16].mxu1 %vm502_vm4, %v1757_v55 }
 0xe66   : > { %2363 = vmatprep.mubr.msk.f32.mxu1 %vm2809_vm0, %v2810_v1  ;;  %2436 = vmatpush3.bf16.msra.mxu1 %v2435_v61  ;;  %v1851_v1 = vld [vmem:[#allocation8 + $0x30] sm:$0xff]  ;;  %vm1404_vm0 = vcmask 786048  }
 0xe67   : > { %v686_v56 = vpop.permute.xlu0 %685  ;;  %2437 = vmatprep.subr.bf16.mxu1 %v2808_v0  ;;  %v2444_v6 = vpack.c.bf16 %v1852_v5, %v1851_v1 }
 0xe68   : > { %689 = vst.msk [vmem:[%s3134_s30] sm:$0xff] %vm688_vm11, %v686_v56 }
 0xe6a   : > { %2439 = vmatpush3.bf16.msra.mxu1 %v2438_v63 }
 0xe6b   : > { %2440 = vmatprep.subr.bf16.mxu1 %v2808_v0  ;;  %v1044_v9 = vpop.permute.xlu0 %1043 }
 0xe6e   : > { %2442 = vmatpush3.bf16.msra.mxu1 %v2441_v4 }
 0xe6f   : > { %2443 = vmatprep.subr.bf16.mxu1 %v2808_v0  ;;  %v1402_v11 = vpop.permute.xlu0 %1401 }
 0xe72   : > { %2445 = vmatpush3.bf16.msra.mxu1 %v2444_v6 }
 0xed7   : > { %v1760_v13 = vpop.permute.xlu0 %1759 }
 0xf38   : > { %v1834_v7 = vpop.f32.mrb[16].mxu1 }
 0xf39   : > { %1839 = vrot.lane.b32.xlu1 %v1834_v7, %s2811_s14  ;;  %v2346_v8 = vpop.f32.mrb[17].mxu1  ;;  %s2138_s14 = sshll.u32 %s2884_s25, 7 }
 0xf3a   : > { %s3292_s17 = scalar_lea.hbm %s3374_s6, %s2138_s14 }
 0xf3d   : > { %864 = vrot.lane.b32.xlu1 %v3169_v36, %s2818_s15  ;;  %s1940_s15 = scalar_lea.sflag [#allocation11], %s3044_s10 }
 0xf41   : > { %1222 = vrot.lane.b32.xlu1 %v3202_v60, %s2812_s7 }
 0xf45   : > { %1580 = vrot.lane.b32.xlu1 %v3238_v37, %s2819_s16  ;;  %s2699_s16 = scalar_lea.vmem %s1967_s19, 128 }
 0xf46   : > { %p2700_p11 = scmp.ne.s32.totalorder %s1967_s19, %s2699_s16  ;;  %p2707_p9 = scmp.lt.s32.totalorder %s2705_s26, %s2699_s16 }
 0xf48   : > { %p2701_p2 = pnand %p2700_p11, %p3394_p0  ;;  %p2708_p12 = por %p2707_p9, %p2706_p7 }
 0xf4a   : > { %p2702_p3 = pneg %p2701_p2 }
 0xf4c   : > { %p2709_p1 = pnand %p2708_p12, %p2702_p3 }
 0xfab   : > { %v1840_v0 = vpop.permute.xlu1 %1839 }
 0xfac   : > { %1843 = vst.msk [vmem:[#allocation2] sm:$0xff] %vm1842_vm12, %v1840_v0 }
 0xfaf   : > { %v865_v10 = vpop.permute.xlu1 %864 }
 0xfb0   : > { %868 = vst.msk [vmem:[%s3134_s30] sm:$0xff] %vm867_vm13, %v865_v10 }
 0xfb1   : > { %1047 = vst.msk [vmem:[%s3134_s30] sm:$0xff] %vm1046_vm14, %v1044_v9 }
 0xfb3   : > { %v1223_v36 = vpop.permute.xlu1 %1222  ;;  %v1844_v60 = vld [vmem:[#allocation2] sm:$0xff] }
 0xfb4   : > { %1226 = vst.msk [vmem:[%s3134_s30] sm:$0xff] %vm1225_vm15, %v1223_v36  ;;  %2364 = vmatmul.mubr.msk.f32.vlgmr.msra.gmra.mrb[18].mxu1 %vm328_vm1, %v1844_v60 }
 0xfb5   : > { %1405 = vst.msk [vmem:[%s3134_s30] sm:$0xff] %vm1404_vm0, %v1402_v11 }
 0xfb7   : > { %v1581_v12 = vpop.permute.xlu1 %1580 }
 0xfb8   : > { %1584 = vst.msk [vmem:[%s3134_s30] sm:$0xff] %vm1583_vm2, %v1581_v12 }
 0xfb9   : > { %1763 = vst.msk [vmem:[%s3134_s30] sm:$0xff] %vm1762_vm3, %v1760_v13 }
 0xfba   : > { %2712 = shalt.err (!%p2709_p1)
}
 0xfbb   : > { %s2713_s30 = scalar_lea.hbm %s3292_s17, 128  ;;  %s2717_s7 = scalar_lea.hbm %s3374_s6, 256 }
 0xfbc   : > { %p2714_p13 = scmp.ne.s32.totalorder %s3292_s17, %s2713_s30  ;;  %p2718_p4 = scmp.lt.u32.totalorder %s3292_s17, %s3374_s6 }
 0xfbd   : > { %p2719_p5 = scmp.lt.u32.totalorder %s2717_s7, %s2713_s30  ;;  %p2721_p11 = scmp.lt.u32.totalorder %s2713_s30, %s3292_s17 }
 0xfbe   : > { %p2715_p6 = pnand %p2714_p13, %p3394_p0 }
 0xfbf   : > { %p2720_p8 = por %p2719_p5, %p2718_p4 }
 0xfc0   : > { %p2716_p10 = pneg %p2715_p6 }
 0xfc1   : > { %p2722_p2 = por %p2721_p11, %p2720_p8 }
 0xfc3   : > { %p2723_p3 = pnand %p2722_p2, %p2716_p10 }
 0xfc5   : > { %2726 = shalt.err (!%p2723_p3)
}
 0xfc6   : > { %2460 = dma.vmem_to_hbm [thread:$0]  (%p3394_p0), %s1967_s19, 128, %s3292_s17, %s1940_s15   ;;  %v2134_v14 = vld [vmem:[%s3372_s4] ss:$0 sm:$0xff] }
 0xfc7   : > { %s302_s26 = scalar_lea.vmem [#allocation9], %s2096_s20  ;;  %s3323_s7 = scalar_lea.hbm %s3373_s5, %s2138_s14 }
 0xfc8   : > { %s1953_s13 = sshll.u32 %s302_s26, 4  ;;  %s1935_s17 = scalar_lea.sflag [#allocation5], %s3044_s10  ;;  %s3325_s13 = int_to_ptr.vmem [resolvable:$true] %s1953_s13 }
 0xfc9   : > { %s2727_s19 = scalar_lea.vmem %s3325_s13, 128  ;;  %s2827_s20 = smov [#allocation9]  }
 0xfca   : > { %p2728_p7 = scmp.ne.s32.totalorder %s3325_s13, %s2727_s19  ;;  %s2731_s25 = sshll.u32 %s2827_s20, 4  ;;  %s2732_s25 = int_to_ptr.vmem [resolvable:$false] %s2731_s25 }
 0xfcb   : > { %s2733_s15 = scalar_lea.vmem %s2732_s25, 256  ;;  %p2734_p1 = scmp.lt.s32.totalorder %s3325_s13, %s2732_s25 }
 0xfcc   : > { %p2729_p9 = pnand %p2728_p7, %p3394_p0  ;;  %p2735_p13 = scmp.lt.s32.totalorder %s2733_s15, %s2727_s19 }
 0xfce   : > { %p2730_p12 = pneg %p2729_p9  ;;  %p2736_p6 = por %p2735_p13, %p2734_p1 }
 0xfd0   : > { %p2737_p10 = pnand %p2736_p6, %p2730_p12 }
0x1087   : > { %v1929_v15 = vpop.f32.mrb[18].mxu1 }
0x1088   : > { %v1930_v16 = vadd.f32 %v2134_v14, %v1929_v15  ;;  %v2365_v17 = vpop.f32.mrb[19].mxu1 }
0x108a   : > { %1933 = vst.msk [vmem:[%s302_s26] sm:$0xff] %vm328_vm1, %v1930_v16 }
0x108b   : > { %2740 = shalt.err (!%p2737_p10)
}
0x108c   : > { %s2741_s10 = scalar_lea.hbm %s3323_s7, 128  ;;  %s2745_s27 = scalar_lea.hbm %s3373_s5, 256 }
0x108d   : > { %p2742_p4 = scmp.ne.s32.totalorder %s3323_s7, %s2741_s10  ;;  %p2746_p11 = scmp.lt.u32.totalorder %s3323_s7, %s3373_s5 }
0x108e   : > { %p2747_p2 = scmp.lt.u32.totalorder %s2745_s27, %s2741_s10  ;;  %p2749_p7 = scmp.lt.u32.totalorder %s2741_s10, %s3323_s7 }
0x108f   : > { %p2743_p5 = pnand %p2742_p4, %p3394_p0 }
0x1090   : > { %p2748_p3 = por %p2747_p2, %p2746_p11 }
0x1091   : > { %p2744_p8 = pneg %p2743_p5 }
0x1092   : > { %p2750_p9 = por %p2749_p7, %p2748_p3 }
0x1094   : > { %p2751_p12 = pnand %p2750_p9, %p2744_p8 }
0x1096   : > { %2754 = shalt.err (!%p2751_p12)
}
0x1097   : > { %2459 = dma.vmem_to_hbm [thread:$0]  (%p3394_p0), %s3325_s13, 128, %s3323_s7, %s1935_s17  }
0x1098 PF: > { %s1978_s26 = sand.u32 1, %s2789_s21   ;;  %p3395_p1 = scmp.ne.s32.totalorder %s3381_s28, 0 }
0x1099   : > { %p3396_p13 = scmp.ge.s32.totalorder %s2801_s24, 2  ;;  %s1979_s30 = scalar_lea.sflag [#allocation5], %s1978_s26 }
0x109b   : > { %p2475_p6 = pnand %p3396_p13, %p3395_p1 }
0x109d   : > { %2780 = dma.done.wait (!%p2475_p6), %s1979_s30, 128  }
0x109e   : > { %2782 = vsyncadd (!%p2475_p6), %s1979_s30, 4294967168  ;;  %s1988_s12 = scalar_lea.sflag [#allocation11], %s1978_s26 }
0x109f   : > { %2784 = dma.done.wait (!%p2475_p6), %s1988_s12, 128  }
0x10a0   : > { %2786 = vsyncadd (!%p2475_p6), %s1988_s12, 4294967168  ;;  %p24_p0 = scmp.ge.s32.totalorder %s2979_s8, 4   ;;  %s3397_s21 = smov %s2793_s22 }
0x10a1   : > { %s3398_s22 = smov %s2797_s23  ;;  %s3399_s23 = smov %s2995_s11 }
0x10a2   : > { %s3400_s24 = smov %s2979_s8  ;;  %26 = sbr.rel (!%p24_p0) target bundleno = 8 (0x8), region = 110 }
0x10a9   :  { %1993 = vsyncpa [#allocation4], 1 }
0x10aa   :  { %1995 = vsyncpa [#allocation4 + $0x1], 1 }
0x10ab   :  { %1996 = vsyncpa [#allocation7], 1 }
0x10ac   :  { %1997 = vsyncpa [#allocation5], 1 }
0x10ad   :  { %1999 = vsyncpa [#allocation5 + $0x1], 1 }
0x10ae   :  { %2000 = vsyncpa [#allocation11], 1 }
0x10af   :  { %2002 = vsyncpa [#allocation11 + $0x1], 1 }

</bundles_post_ra>
